<compile_context>
chip_gen: v6e
topology: v6e:2x2x1
jax: 0.10.0
libtpu: 0.0.40
codegen_flags: <defaults>
</compile_context>

<pallas_src>
import jax
import jax.numpy as jnp
from jax.experimental import pallas as pl
from jax.experimental.pallas import tpu as pltpu


# --------------------------------------------------------------------------- #
# Kernel
# --------------------------------------------------------------------------- #
def _res_conv1d_kernel(x_ref, wa_ref, wb_ref, bias_ref, o_ref):
    """One grid step: NB batches, full length L, all channels.

    x_ref    : (NB, L, Cin)    f32
    wa_ref   : (4, Cin, Cout)  bf16  rows 0..2: conv1 taps (BN1 folded),
                                     row 3: 1x1 shortcut conv (BN3 folded)
    wb_ref   : (5, Cout, Cout) bf16  rows 0..2: conv2 taps (BN2 folded),
                                     row 3: SE fc1, row 4: SE fc2
    bias_ref : (8, Cout)       f32   rows: b1, b2, bsc, bse1, bse2, prelu-alpha
    o_ref    : (NB, L, Cout)   f32
    """
    NB, L, Cin = x_ref.shape
    Cout = o_ref.shape[2]
    M = NB * L
    f32, bf16 = jnp.float32, jnp.bfloat16

    # Fold batch into the matmul M dimension (free relabel when L % 8 == 0).
    x2 = x_ref[...].reshape(M, Cin)

    # Per-batch "same" padding masks: row r belongs to batch r // L.
    row = jax.lax.broadcasted_iota(jnp.int32, (M, 1), 0)
    first_row = (row % L) == 0          # previous-tap input is zero padding
    last_row = (row % L) == (L - 1)     # next-tap input is zero padding

    b1 = bias_ref[0:1, :]
    b2 = bias_ref[1:2, :]
    bsc = bias_ref[2:3, :]
    bse1 = bias_ref[3:4, :]
    bse2 = bias_ref[4:5, :]
    alpha = bias_ref[5:6, 0:1]          # PReLU slope, (1, 1)

    def conv3(xin, w_ref, bias):
        # k=3 conv as three matmuls over rolled copies (XLU roll, no concat).
        # Tap order matches PyTorch cross-correlation:
        #   y[i] = w[0]*x[i-1] + w[1]*x[i] + w[2]*x[i+1]   (zero padded).
        xm = jnp.where(first_row, 0.0, pltpu.roll(xin, shift=1, axis=0))
        xp = jnp.where(last_row, 0.0, pltpu.roll(xin, shift=M - 1, axis=0))
        y = jnp.dot(xm.astype(bf16), w_ref[0], preferred_element_type=f32)
        y += jnp.dot(xin.astype(bf16), w_ref[1], preferred_element_type=f32)
        y += jnp.dot(xp.astype(bf16), w_ref[2], preferred_element_type=f32)
        return y + bias

    # Residual branch: conv3 (+BN1 folded) -> ReLU -> conv3 (+BN2 folded).
    y1 = jnp.maximum(conv3(x2, wa_ref, b1), 0.0)
    res2 = conv3(y1, wb_ref, b2)                           # (M, Cout) f32

    # SE gate: per-batch global avg pool over L -> FC -> PReLU -> FC -> sigmoid.
    res3 = res2.reshape(NB, L, Cout)
    m = jnp.sum(res3, axis=1) * (1.0 / L)                  # (NB, Cout)
    wse1 = wb_ref[3].astype(f32)
    wse2 = wb_ref[4].astype(f32)
    h = jnp.dot(m, wse1, preferred_element_type=f32) + bse1
    h = jnp.where(h >= 0.0, h, alpha * h)                  # PReLU (1 slope)
    g = jax.nn.sigmoid(jnp.dot(h, wse2, preferred_element_type=f32) + bse2)

    # Shortcut: 1x1 conv (+BN3 folded).
    sc2 = jnp.dot(x2.astype(bf16), wa_ref[3], preferred_element_type=f32) + bsc

    out3 = jnp.maximum(res3 * g[:, None, :] + sc2.reshape(NB, L, Cout), 0.0)
    o_ref[...] = out3.astype(o_ref.dtype)


# --------------------------------------------------------------------------- #
# Wrapper
# --------------------------------------------------------------------------- #
def res_conv1d(x_blc, wa, wb, biases, *, max_block_rows=1024):
    """x_blc: (B, L, Cin) channels-last.  Returns (B, L, Cout) f32."""
    B, L, Cin = x_blc.shape
    Cout = wa.shape[2]
    assert wa.shape == (4, Cin, Cout)
    assert wb.shape == (5, Cout, Cout)
    assert biases.shape == (8, Cout)

    # Pick NB (batches per grid step): fold as much batch as possible into the
    # matmul M dimension, but keep >= 2 grid blocks when B >= 2 so multi-TC
    # chips (v7x) get parallel work.
    nb = 1
    for cand in range(1, B + 1):
        if B % cand != 0 or cand * L > max(max_block_rows, L):
            continue
        if B // cand >= 2 or B == 1:
            nb = cand
    grid = (B // nb,)

    return pl.pallas_call(
        _res_conv1d_kernel,
        out_shape=jax.ShapeDtypeStruct((B, L, Cout), jnp.float32),
        grid_spec=pltpu.PrefetchScalarGridSpec(
            num_scalar_prefetch=0,
            grid=grid,
            in_specs=[
                pl.BlockSpec((nb, L, Cin), lambda i: (i, 0, 0)),
                pl.BlockSpec((4, Cin, Cout), lambda i: (0, 0, 0)),
                pl.BlockSpec((5, Cout, Cout), lambda i: (0, 0, 0)),
                pl.BlockSpec((8, Cout), lambda i: (0, 0)),
            ],
            out_specs=pl.BlockSpec((nb, L, Cout), lambda i: (i, 0, 0)),
        ),
        compiler_params=pltpu.CompilerParams(
            dimension_semantics=("parallel",)),
    )(x_blc, wa, wb, biases)


# --------------------------------------------------------------------------- #
# Host-side parameter handling
# --------------------------------------------------------------------------- #
def make_params(key, cin, cout):
    """Synthetic ResConv1d(_in=cin, _out=cout) parameters (eval mode).

    Conv weights are pre-transposed for channels-last matmul:
      PyTorch Conv1d weight (Cout, Cin, K) -> here (K, Cin, Cout).
    BatchNorm running stats are pre-reduced to per-channel scale/shift.
    SELayer hidden == cout (ResConv1d uses SELayer(_out, _out)).
    """
    ks = jax.random.split(key, 13)
    eps = 1e-5

    def bn(kw, c):
        k1, k2, k3, k4 = jax.random.split(kw, 4)
        gamma = 1.0 + 0.1 * jax.random.normal(k1, (c,))
        beta = 0.1 * jax.random.normal(k2, (c,))
        rmean = 0.1 * jax.random.normal(k3, (c,))
        rvar = jnp.abs(jax.random.normal(k4, (c,))) * 0.5 + 0.5
        scale = gamma / jnp.sqrt(rvar + eps)
        return scale, beta - rmean * scale

    bn1s, bn1b = bn(ks[0], cout)
    bn2s, bn2b = bn(ks[1], cout)
    bn3s, bn3b = bn(ks[2], cout)
    hidden = cout
    p = {
        "w1": 0.1 * jax.random.normal(ks[3], (3, cin, cout)),
        "b1": 0.1 * jax.random.normal(ks[4], (cout,)),
        "bn1s": bn1s, "bn1b": bn1b,
        "w2": 0.1 * jax.random.normal(ks[5], (3, cout, cout)),
        "b2": 0.1 * jax.random.normal(ks[6], (cout,)),
        "bn2s": bn2s, "bn2b": bn2b,
        "wse1": 0.2 * jax.random.normal(ks[7], (cout, hidden)),
        "bse1": 0.1 * jax.random.normal(ks[8], (hidden,)),
        "alpha": jnp.asarray(0.25),                    # nn.PReLU() default
        "wse2": 0.2 * jax.random.normal(ks[9], (hidden, cout)),
        "bse2": 0.1 * jax.random.normal(ks[10], (cout,)),
        "wsc": 0.1 * jax.random.normal(ks[11], (cin, cout)),
        "bsc": 0.1 * jax.random.normal(ks[12], (cout,)),
        "bn3s": bn3s, "bn3b": bn3b,
    }
    return {k: jnp.asarray(v, jnp.float32) for k, v in p.items()}


def fold_params(p, weight_dtype=jnp.bfloat16):
    """Fold eval-mode BN scale/shift (and conv bias) into the conv weights."""
    return {
        "w1": (p["w1"] * p["bn1s"][None, None, :]).astype(weight_dtype),
        "b1": p["b1"] * p["bn1s"] + p["bn1b"],
        "w2": (p["w2"] * p["bn2s"][None, None, :]).astype(weight_dtype),
        "b2": p["b2"] * p["bn2s"] + p["bn2b"],
        "wsc": (p["wsc"] * p["bn3s"][None, :]).astype(weight_dtype),
        "bsc": p["bsc"] * p["bn3s"] + p["bn3b"],
        "wse1": p["wse1"].astype(weight_dtype), "bse1": p["bse1"],
        "wse2": p["wse2"].astype(weight_dtype), "bse2": p["bse2"],
        "alpha": p["alpha"],
    }


def pack_params(fp):
    """Pack folded params into 3 kernel tensors (2 weight stacks + biases)."""
    cin, cout = fp["wsc"].shape
    assert fp["wse1"].shape == (cout, cout), "SELayer hidden must equal Cout"
    wa = jnp.concatenate([fp["w1"], fp["wsc"][None]], axis=0)          # (4,Cin,Cout)
    wb = jnp.concatenate(
        [fp["w2"], fp["wse1"][None], fp["wse2"][None]], axis=0)        # (5,Cout,Cout)
    zero = jnp.zeros((cout,), jnp.float32)
    biases = jnp.stack(
        [fp["b1"], fp["b2"], fp["bsc"], fp["bse1"], fp["bse2"],
         jnp.full((cout,), fp["alpha"], jnp.float32), zero, zero],
        axis=0).astype(jnp.float32)                                    # (8,Cout)
    return wa, wb, biases


# --------------------------------------------------------------------------- #
# Pure-JAX references
# --------------------------------------------------------------------------- #
_HI = jax.lax.Precision.HIGHEST


def reference_raw(x_blc, p):
    """f32 reference with un-folded eval-mode BatchNorm (scale/shift)."""
    B, L, _ = x_blc.shape

    def mm3(a, w):
        return jnp.einsum("bli,io->blo", a, w, precision=_HI)

    def conv3(inp, w, b):
        z = jnp.zeros((B, 1, inp.shape[2]), inp.dtype)
        xm = jnp.concatenate([z, inp[:, :-1]], axis=1)
        xp = jnp.concatenate([inp[:, 1:], z], axis=1)
        return mm3(xm, w[0]) + mm3(inp, w[1]) + mm3(xp, w[2]) + b

    y1 = jnp.maximum(conv3(x_blc, p["w1"], p["b1"]) * p["bn1s"] + p["bn1b"], 0.0)
    res = conv3(y1, p["w2"], p["b2"]) * p["bn2s"] + p["bn2b"]

    m = jnp.mean(res, axis=1)
    h = jnp.dot(m, p["wse1"], precision=_HI) + p["bse1"]
    h = jnp.where(h >= 0.0, h, p["alpha"] * h)
    g = jax.nn.sigmoid(jnp.dot(h, p["wse2"], precision=_HI) + p["bse2"])

    sc = (mm3(x_blc, p["wsc"]) + p["bsc"]) * p["bn3s"] + p["bn3b"]
    return jnp.maximum(res * g[:, None, :] + sc, 0.0)


def reference_folded(x_blc, fp, mm_dtype=jnp.bfloat16):
    """Reference on folded params; conv/shortcut matmuls in mm_dtype with f32
    accumulation (mirrors the kernel), SE matmuls in f32."""
    B, L, _ = x_blc.shape
    f32 = jnp.float32

    def cmm(a, w):
        return jnp.einsum("bli,io->blo", a.astype(mm_dtype), w.astype(mm_dtype),
                          preferred_element_type=f32, precision=_HI)

    def conv3(inp, w, b):
        z = jnp.zeros((B, 1, inp.shape[2]), inp.dtype)
        xm = jnp.concatenate([z, inp[:, :-1]], axis=1)
        xp = jnp.concatenate([inp[:, 1:], z], axis=1)
        return cmm(xm, w[0]) + cmm(inp, w[1]) + cmm(xp, w[2]) + b

    y1 = jnp.maximum(conv3(x_blc, fp["w1"], fp["b1"]), 0.0)
    res = conv3(y1, fp["w2"], fp["b2"])

    m = jnp.mean(res, axis=1)
    h = jnp.dot(m, fp["wse1"].astype(f32), precision=_HI) + fp["bse1"]
    h = jnp.where(h >= 0.0, h, fp["alpha"] * h)
    g = jax.nn.sigmoid(jnp.dot(h, fp["wse2"].astype(f32), precision=_HI) + fp["bse2"])

    sc = cmm(x_blc, fp["wsc"]) + fp["bsc"]
    return jnp.maximum(res * g[:, None, :] + sc, 0.0)


# --------------------------------------------------------------------------- #
# Demo / self-check
# --------------------------------------------------------------------------- #
if __name__ == "__main__":
    # Small shapes consistent with MyModule's ResConv1d usage (128/256 channels):
    # Cout = 128 keeps stores lane-dense, L a multiple of 8 keeps reshapes free.
    B, Cin, Cout, L = 4, 128, 128, 16
    key = jax.random.PRNGKey(0)
    kx, kp = jax.random.split(key)

    # PyTorch-style NCL input, moved to the kernel's channels-last layout.
    x_ncl = jax.random.normal(kx, (B, Cin, L), dtype=jnp.float32)
    x_blc = jnp.transpose(x_ncl, (0, 2, 1))

    raw = make_params(kp, Cin, Cout)
    fp_bf16 = fold_params(raw, jnp.bfloat16)
    wa, wb, biases = pack_params(fp_bf16)

    out = jax.block_until_ready(res_conv1d(x_blc, wa, wb, biases))
    assert out.shape == (B, L, Cout)

    # (1) BN/bias folding is exact (pure-f32 host check).
    fp_f32 = fold_params(raw, jnp.float32)
    ref_raw = reference_raw(x_blc, raw)
    ref_fold = reference_folded(x_blc, fp_f32, mm_dtype=jnp.float32)
    assert jnp.allclose(ref_fold, ref_raw, atol=1e-3, rtol=1e-4), "folding mismatch"

    # (2) Kernel matches the bf16-matmul reference on the folded params.
    ref = reference_folded(x_blc, fp_bf16, mm_dtype=jnp.bfloat16)
    assert jnp.allclose(out, ref, atol=2e-2, rtol=2e-3), "kernel mismatch vs reference"

    print("KERNEL_OK")
</pallas_src>

<mosaic_0001>
module attributes {stable_mosaic.version = 11 : i64} {
  func.func @_res_conv1d_kernel(%arg0: i32, %arg1: memref<2x16x128xf32, #tpu.memory_space<vmem>>, %arg2: memref<4x128x128xbf16, #tpu.memory_space<vmem>>, %arg3: memref<5x128x128xbf16, #tpu.memory_space<vmem>>, %arg4: memref<8x128xf32, #tpu.memory_space<vmem>>, %arg5: memref<2x16x128xf32, #tpu.memory_space<vmem>>) attributes {dimension_semantics = [#tpu.dimension_semantics<parallel>], iteration_bounds = array<i64: 2>, scalar_prefetch = 0 : i64, scratch_operands = 0 : i64, tpu.core_type = #tpu.core_type<tc>, window_params = [{transform_indices = @transform_0, window_bounds = array<i64: 2, 16, 128>}, {pipeline_mode = #tpu.pipeline_mode<synchronous>, transform_indices = @transform_1, window_bounds = array<i64: 4, 128, 128>}, {pipeline_mode = #tpu.pipeline_mode<synchronous>, transform_indices = @transform_2, window_bounds = array<i64: 5, 128, 128>}, {pipeline_mode = #tpu.pipeline_mode<synchronous>, transform_indices = @transform_3, window_bounds = array<i64: 8, 128>}, {transform_indices = @transform_4, window_bounds = array<i64: 2, 16, 128>}]} {
    %c0 = arith.constant 0 : index
    %c0_0 = arith.constant 0 : index
    %c0_1 = arith.constant 0 : index
    %0 = vector.load %arg1[%c0, %c0_0, %c0_1] : memref<2x16x128xf32, #tpu.memory_space<vmem>>, vector<2x16x128xf32>
    %1 = vector.shape_cast %0 : vector<2x16x128xf32> to vector<32x128xf32>
    %2 = tpu.iota {dimensions = array<i32: 0>} : vector<32x1xi32>
    %c16_i32 = arith.constant 16 : i32
    %c0_i32 = arith.constant 0 : i32
    %3 = arith.cmpi eq, %c16_i32, %c0_i32 : i32
    %c1_i32 = arith.constant 1 : i32
    %4 = arith.select %3, %c1_i32, %c16_i32 : i32
    %5 = vector.broadcast %4 : i32 to vector<32x1xi32>
    %6 = arith.remsi %2, %5 : vector<32x1xi32>
    %c0_i32_2 = arith.constant 0 : i32
    %7 = vector.broadcast %c0_i32_2 : i32 to vector<32x1xi32>
    %8 = arith.cmpi ne, %6, %7 : vector<32x1xi32>
    %c0_i32_3 = arith.constant 0 : i32
    %9 = vector.broadcast %c0_i32_3 : i32 to vector<32x1xi32>
    %10 = arith.cmpi slt, %6, %9 : vector<32x1xi32>
    %c0_i32_4 = arith.constant 0 : i32
    %11 = arith.cmpi slt, %4, %c0_i32_4 : i32
    %12 = vector.broadcast %11 : i1 to vector<32x1xi1>
    %13 = vector.broadcast %12 : vector<32x1xi1> to vector<32x1xi1>
    %14 = arith.xori %10, %13 : vector<32x1xi1>
    %15 = arith.andi %14, %8 : vector<32x1xi1>
    %16 = vector.broadcast %4 : i32 to vector<32x1xi32>
    %17 = arith.addi %6, %16 : vector<32x1xi32>
    %18 = arith.select %15, %17, %6 : vector<32x1xi1>, vector<32x1xi32>
    %c0_i32_5 = arith.constant 0 : i32
    %19 = vector.broadcast %c0_i32_5 : i32 to vector<32x1xi32>
    %20 = arith.cmpi eq, %18, %19 : vector<32x1xi32>
    %c16_i32_6 = arith.constant 16 : i32
    %c0_i32_7 = arith.constant 0 : i32
    %21 = arith.cmpi eq, %c16_i32_6, %c0_i32_7 : i32
    %c1_i32_8 = arith.constant 1 : i32
    %22 = arith.select %21, %c1_i32_8, %c16_i32_6 : i32
    %23 = vector.broadcast %22 : i32 to vector<32x1xi32>
    %24 = arith.remsi %2, %23 : vector<32x1xi32>
    %c0_i32_9 = arith.constant 0 : i32
    %25 = vector.broadcast %c0_i32_9 : i32 to vector<32x1xi32>
    %26 = arith.cmpi ne, %24, %25 : vector<32x1xi32>
    %c0_i32_10 = arith.constant 0 : i32
    %27 = vector.broadcast %c0_i32_10 : i32 to vector<32x1xi32>
    %28 = arith.cmpi slt, %24, %27 : vector<32x1xi32>
    %c0_i32_11 = arith.constant 0 : i32
    %29 = arith.cmpi slt, %22, %c0_i32_11 : i32
    %30 = vector.broadcast %29 : i1 to vector<32x1xi1>
    %31 = vector.broadcast %30 : vector<32x1xi1> to vector<32x1xi1>
    %32 = arith.xori %28, %31 : vector<32x1xi1>
    %33 = arith.andi %32, %26 : vector<32x1xi1>
    %34 = vector.broadcast %22 : i32 to vector<32x1xi32>
    %35 = arith.addi %24, %34 : vector<32x1xi32>
    %36 = arith.select %33, %35, %24 : vector<32x1xi1>, vector<32x1xi32>
    %c15_i32 = arith.constant 15 : i32
    %37 = vector.broadcast %c15_i32 : i32 to vector<32x1xi32>
    %38 = arith.cmpi eq, %36, %37 : vector<32x1xi32>
    %c0_12 = arith.constant 0 : index
    %c0_13 = arith.constant 0 : index
    %39 = vector.load %arg4[%c0_12, %c0_13] : memref<8x128xf32, #tpu.memory_space<vmem>>, vector<1x128xf32>
    %c1 = arith.constant 1 : index
    %c0_14 = arith.constant 0 : index
    %40 = vector.load %arg4[%c1, %c0_14] : memref<8x128xf32, #tpu.memory_space<vmem>>, vector<1x128xf32>
    %c2 = arith.constant 2 : index
    %c0_15 = arith.constant 0 : index
    %41 = vector.load %arg4[%c2, %c0_15] : memref<8x128xf32, #tpu.memory_space<vmem>>, vector<1x128xf32>
    %c3 = arith.constant 3 : index
    %c0_16 = arith.constant 0 : index
    %42 = vector.load %arg4[%c3, %c0_16] : memref<8x128xf32, #tpu.memory_space<vmem>>, vector<1x128xf32>
    %c4 = arith.constant 4 : index
    %c0_17 = arith.constant 0 : index
    %43 = vector.load %arg4[%c4, %c0_17] : memref<8x128xf32, #tpu.memory_space<vmem>>, vector<1x128xf32>
    %c5 = arith.constant 5 : index
    %c0_18 = arith.constant 0 : index
    %44 = vector.load %arg4[%c5, %c0_18] : memref<8x128xf32, #tpu.memory_space<vmem>>, vector<1x1xf32>
    %c1_i32_19 = arith.constant 1 : i32
    %45 = tpu.dynamic_rotate %1 by %c1_i32_19 dim 0 : vector<32x128xf32>, i32 -> vector<32x128xf32>
    %cst = arith.constant 0.000000e+00 : f32
    %46 = vector.shape_cast %20 : vector<32x1xi1> to vector<32x1xi1>
    %47 = vector.broadcast %46 : vector<32x1xi1> to vector<32x128xi1>
    %48 = vector.broadcast %cst : f32 to vector<32x128xf32>
    %49 = arith.select %47, %48, %45 : vector<32x128xi1>, vector<32x128xf32>
    %c31_i32 = arith.constant 31 : i32
    %50 = tpu.dynamic_rotate %1 by %c31_i32 dim 0 : vector<32x128xf32>, i32 -> vector<32x128xf32>
    %cst_20 = arith.constant 0.000000e+00 : f32
    %51 = vector.shape_cast %38 : vector<32x1xi1> to vector<32x1xi1>
    %52 = vector.broadcast %51 : vector<32x1xi1> to vector<32x128xi1>
    %53 = vector.broadcast %cst_20 : f32 to vector<32x128xf32>
    %54 = arith.select %52, %53, %50 : vector<32x128xi1>, vector<32x128xf32>
    %55 = arith.truncf %49 : vector<32x128xf32> to vector<32x128xbf16>
    %c0_21 = arith.constant 0 : index
    %c0_22 = arith.constant 0 : index
    %c0_23 = arith.constant 0 : index
    %56 = vector.load %arg2[%c0_21, %c0_22, %c0_23] : memref<4x128x128xbf16, #tpu.memory_space<vmem>>, vector<1x128x128xbf16>
    %57 = vector.shape_cast %56 : vector<1x128x128xbf16> to vector<128x128xbf16>
    %cst_24 = arith.constant dense<0.000000e+00> : vector<32x128xf32>
    %58 = tpu.matmul %55, %57, %cst_24 {dimension_numbers = #tpu.dot_dimension_numbers<[1], [0], [0], [1], [0, 0, 1, 1], [], []>} : vector<32x128xbf16>, vector<128x128xbf16>, vector<32x128xf32> -> vector<32x128xf32>
    %59 = arith.truncf %1 : vector<32x128xf32> to vector<32x128xbf16>
    %c1_25 = arith.constant 1 : index
    %c0_26 = arith.constant 0 : index
    %c0_27 = arith.constant 0 : index
    %60 = vector.load %arg2[%c1_25, %c0_26, %c0_27] : memref<4x128x128xbf16, #tpu.memory_space<vmem>>, vector<1x128x128xbf16>
    %61 = vector.shape_cast %60 : vector<1x128x128xbf16> to vector<128x128xbf16>
    %cst_28 = arith.constant dense<0.000000e+00> : vector<32x128xf32>
    %62 = tpu.matmul %59, %61, %cst_28 {dimension_numbers = #tpu.dot_dimension_numbers<[1], [0], [0], [1], [0, 0, 1, 1], [], []>} : vector<32x128xbf16>, vector<128x128xbf16>, vector<32x128xf32> -> vector<32x128xf32>
    %63 = arith.addf %58, %62 : vector<32x128xf32>
    %64 = arith.truncf %54 : vector<32x128xf32> to vector<32x128xbf16>
    %c2_29 = arith.constant 2 : index
    %c0_30 = arith.constant 0 : index
    %c0_31 = arith.constant 0 : index
    %65 = vector.load %arg2[%c2_29, %c0_30, %c0_31] : memref<4x128x128xbf16, #tpu.memory_space<vmem>>, vector<1x128x128xbf16>
    %66 = vector.shape_cast %65 : vector<1x128x128xbf16> to vector<128x128xbf16>
    %cst_32 = arith.constant dense<0.000000e+00> : vector<32x128xf32>
    %67 = tpu.matmul %64, %66, %cst_32 {dimension_numbers = #tpu.dot_dimension_numbers<[1], [0], [0], [1], [0, 0, 1, 1], [], []>} : vector<32x128xbf16>, vector<128x128xbf16>, vector<32x128xf32> -> vector<32x128xf32>
    %68 = arith.addf %63, %67 : vector<32x128xf32>
    %69 = vector.broadcast %39 : vector<1x128xf32> to vector<32x128xf32>
    %70 = arith.addf %68, %69 : vector<32x128xf32>
    %cst_33 = arith.constant 0.000000e+00 : f32
    %71 = vector.broadcast %cst_33 : f32 to vector<32x128xf32>
    %72 = arith.maximumf %70, %71 : vector<32x128xf32>
    %c1_i32_34 = arith.constant 1 : i32
    %73 = tpu.dynamic_rotate %72 by %c1_i32_34 dim 0 : vector<32x128xf32>, i32 -> vector<32x128xf32>
    %cst_35 = arith.constant 0.000000e+00 : f32
    %74 = vector.shape_cast %20 : vector<32x1xi1> to vector<32x1xi1>
    %75 = vector.broadcast %74 : vector<32x1xi1> to vector<32x128xi1>
    %76 = vector.broadcast %cst_35 : f32 to vector<32x128xf32>
    %77 = arith.select %75, %76, %73 : vector<32x128xi1>, vector<32x128xf32>
    %c31_i32_36 = arith.constant 31 : i32
    %78 = tpu.dynamic_rotate %72 by %c31_i32_36 dim 0 : vector<32x128xf32>, i32 -> vector<32x128xf32>
    %cst_37 = arith.constant 0.000000e+00 : f32
    %79 = vector.shape_cast %38 : vector<32x1xi1> to vector<32x1xi1>
    %80 = vector.broadcast %79 : vector<32x1xi1> to vector<32x128xi1>
    %81 = vector.broadcast %cst_37 : f32 to vector<32x128xf32>
    %82 = arith.select %80, %81, %78 : vector<32x128xi1>, vector<32x128xf32>
    %83 = arith.truncf %77 : vector<32x128xf32> to vector<32x128xbf16>
    %c0_38 = arith.constant 0 : index
    %c0_39 = arith.constant 0 : index
    %c0_40 = arith.constant 0 : index
    %84 = vector.load %arg3[%c0_38, %c0_39, %c0_40] : memref<5x128x128xbf16, #tpu.memory_space<vmem>>, vector<1x128x128xbf16>
    %85 = vector.shape_cast %84 : vector<1x128x128xbf16> to vector<128x128xbf16>
    %cst_41 = arith.constant dense<0.000000e+00> : vector<32x128xf32>
    %86 = tpu.matmul %83, %85, %cst_41 {dimension_numbers = #tpu.dot_dimension_numbers<[1], [0], [0], [1], [0, 0, 1, 1], [], []>} : vector<32x128xbf16>, vector<128x128xbf16>, vector<32x128xf32> -> vector<32x128xf32>
    %87 = arith.truncf %72 : vector<32x128xf32> to vector<32x128xbf16>
    %c1_42 = arith.constant 1 : index
    %c0_43 = arith.constant 0 : index
    %c0_44 = arith.constant 0 : index
    %88 = vector.load %arg3[%c1_42, %c0_43, %c0_44] : memref<5x128x128xbf16, #tpu.memory_space<vmem>>, vector<1x128x128xbf16>
    %89 = vector.shape_cast %88 : vector<1x128x128xbf16> to vector<128x128xbf16>
    %cst_45 = arith.constant dense<0.000000e+00> : vector<32x128xf32>
    %90 = tpu.matmul %87, %89, %cst_45 {dimension_numbers = #tpu.dot_dimension_numbers<[1], [0], [0], [1], [0, 0, 1, 1], [], []>} : vector<32x128xbf16>, vector<128x128xbf16>, vector<32x128xf32> -> vector<32x128xf32>
    %91 = arith.addf %86, %90 : vector<32x128xf32>
    %92 = arith.truncf %82 : vector<32x128xf32> to vector<32x128xbf16>
    %c2_46 = arith.constant 2 : index
    %c0_47 = arith.constant 0 : index
    %c0_48 = arith.constant 0 : index
    %93 = vector.load %arg3[%c2_46, %c0_47, %c0_48] : memref<5x128x128xbf16, #tpu.memory_space<vmem>>, vector<1x128x128xbf16>
    %94 = vector.shape_cast %93 : vector<1x128x128xbf16> to vector<128x128xbf16>
    %cst_49 = arith.constant dense<0.000000e+00> : vector<32x128xf32>
    %95 = tpu.matmul %92, %94, %cst_49 {dimension_numbers = #tpu.dot_dimension_numbers<[1], [0], [0], [1], [0, 0, 1, 1], [], []>} : vector<32x128xbf16>, vector<128x128xbf16>, vector<32x128xf32> -> vector<32x128xf32>
    %96 = arith.addf %91, %95 : vector<32x128xf32>
    %97 = vector.broadcast %40 : vector<1x128xf32> to vector<32x128xf32>
    %98 = arith.addf %96, %97 : vector<32x128xf32>
    %99 = vector.shape_cast %98 : vector<32x128xf32> to vector<2x16x128xf32>
    %cst_50 = arith.constant dense<0.000000e+00> : vector<2x128xf32>
    %100 = vector.multi_reduction <add>, %99, %cst_50 [1] : vector<2x16x128xf32> to vector<2x128xf32>
    %cst_51 = arith.constant 6.250000e-02 : f32
    %101 = vector.broadcast %cst_51 : f32 to vector<2x128xf32>
    %102 = arith.mulf %100, %101 : vector<2x128xf32>
    %c3_52 = arith.constant 3 : index
    %c0_53 = arith.constant 0 : index
    %c0_54 = arith.constant 0 : index
    %103 = vector.load %arg3[%c3_52, %c0_53, %c0_54] : memref<5x128x128xbf16, #tpu.memory_space<vmem>>, vector<1x128x128xbf16>
    %104 = vector.shape_cast %103 : vector<1x128x128xbf16> to vector<128x128xbf16>
    %105 = arith.extf %104 : vector<128x128xbf16> to vector<128x128xf32>
    %c4_55 = arith.constant 4 : index
    %c0_56 = arith.constant 0 : index
    %c0_57 = arith.constant 0 : index
    %106 = vector.load %arg3[%c4_55, %c0_56, %c0_57] : memref<5x128x128xbf16, #tpu.memory_space<vmem>>, vector<1x128x128xbf16>
    %107 = vector.shape_cast %106 : vector<1x128x128xbf16> to vector<128x128xbf16>
    %108 = arith.extf %107 : vector<128x128xbf16> to vector<128x128xf32>
    %cst_58 = arith.constant dense<0.000000e+00> : vector<2x128xf32>
    %109 = tpu.matmul %102, %105, %cst_58 {dimension_numbers = #tpu.dot_dimension_numbers<[1], [0], [0], [1], [0, 0, 1, 1], [], []>} : vector<2x128xf32>, vector<128x128xf32>, vector<2x128xf32> -> vector<2x128xf32>
    %110 = vector.broadcast %42 : vector<1x128xf32> to vector<2x128xf32>
    %111 = arith.addf %109, %110 : vector<2x128xf32>
    %cst_59 = arith.constant 0.000000e+00 : f32
    %112 = vector.broadcast %cst_59 : f32 to vector<2x128xf32>
    %113 = arith.cmpf oge, %111, %112 : vector<2x128xf32>
    %114 = vector.broadcast %44 : vector<1x1xf32> to vector<2x128xf32>
    %115 = arith.mulf %114, %111 : vector<2x128xf32>
    %116 = arith.select %113, %111, %115 : vector<2x128xi1>, vector<2x128xf32>
    %cst_60 = arith.constant dense<0.000000e+00> : vector<2x128xf32>
    %117 = tpu.matmul %116, %108, %cst_60 {dimension_numbers = #tpu.dot_dimension_numbers<[1], [0], [0], [1], [0, 0, 1, 1], [], []>} : vector<2x128xf32>, vector<128x128xf32>, vector<2x128xf32> -> vector<2x128xf32>
    %118 = vector.broadcast %43 : vector<1x128xf32> to vector<2x128xf32>
    %119 = arith.addf %117, %118 : vector<2x128xf32>
    %120 = arith.negf %119 : vector<2x128xf32>
    %121 = math.exp %120 : vector<2x128xf32>
    %cst_61 = arith.constant 1.000000e+00 : f32
    %122 = vector.broadcast %cst_61 : f32 to vector<2x128xf32>
    %123 = arith.addf %122, %121 : vector<2x128xf32>
    %124 = arith.divf %122, %123 : vector<2x128xf32>
    %125 = arith.truncf %1 : vector<32x128xf32> to vector<32x128xbf16>
    %c3_62 = arith.constant 3 : index
    %c0_63 = arith.constant 0 : index
    %c0_64 = arith.constant 0 : index
    %126 = vector.load %arg2[%c3_62, %c0_63, %c0_64] : memref<4x128x128xbf16, #tpu.memory_space<vmem>>, vector<1x128x128xbf16>
    %127 = vector.shape_cast %126 : vector<1x128x128xbf16> to vector<128x128xbf16>
    %cst_65 = arith.constant dense<0.000000e+00> : vector<32x128xf32>
    %128 = tpu.matmul %125, %127, %cst_65 {dimension_numbers = #tpu.dot_dimension_numbers<[1], [0], [0], [1], [0, 0, 1, 1], [], []>} : vector<32x128xbf16>, vector<128x128xbf16>, vector<32x128xf32> -> vector<32x128xf32>
    %129 = vector.broadcast %41 : vector<1x128xf32> to vector<32x128xf32>
    %130 = arith.addf %128, %129 : vector<32x128xf32>
    %131 = vector.shape_cast %124 : vector<2x128xf32> to vector<2x1x128xf32>
    %132 = vector.broadcast %131 : vector<2x1x128xf32> to vector<2x16x128xf32>
    %133 = arith.mulf %99, %132 : vector<2x16x128xf32>
    %134 = vector.shape_cast %130 : vector<32x128xf32> to vector<2x16x128xf32>
    %135 = arith.addf %133, %134 : vector<2x16x128xf32>
    %cst_66 = arith.constant 0.000000e+00 : f32
    %136 = vector.broadcast %cst_66 : f32 to vector<2x16x128xf32>
    %137 = arith.maximumf %135, %136 : vector<2x16x128xf32>
    %c0_67 = arith.constant 0 : index
    %c0_68 = arith.constant 0 : index
    %c0_69 = arith.constant 0 : index
    %138 = vector.load %arg5[%c0_67, %c0_68, %c0_69] : memref<2x16x128xf32, #tpu.memory_space<vmem>>, vector<2x16x128xf32>
    tpu.vector_store %arg5[%c0_67, %c0_68, %c0_69], %137 {strides = array<i32>} : memref<2x16x128xf32, #tpu.memory_space<vmem>>, vector<2x16x128xf32>,
    return
  }
  func.func @transform_0(%arg0: i32) -> (i32, i32, i32) {
    %c0_i32 = arith.constant 0 : i32
    %c0_i32_0 = arith.constant 0 : i32
    %c0_i32_1 = arith.constant 0 : i32
    return %arg0, %c0_i32, %c0_i32_0 : i32, i32, i32
  }
  func.func @transform_1(%arg0: i32) -> (i32, i32, i32) {
    %c0_i32 = arith.constant 0 : i32
    %c0_i32_0 = arith.constant 0 : i32
    %c0_i32_1 = arith.constant 0 : i32
    %c0_i32_2 = arith.constant 0 : i32
    return %c0_i32, %c0_i32_0, %c0_i32_1 : i32, i32, i32
  }
  func.func @transform_2(%arg0: i32) -> (i32, i32, i32) {
    %c0_i32 = arith.constant 0 : i32
    %c0_i32_0 = arith.constant 0 : i32
    %c0_i32_1 = arith.constant 0 : i32
    %c0_i32_2 = arith.constant 0 : i32
    return %c0_i32, %c0_i32_0, %c0_i32_1 : i32, i32, i32
  }
  func.func @transform_3(%arg0: i32) -> (i32, i32) {
    %c0_i32 = arith.constant 0 : i32
    %c0_i32_0 = arith.constant 0 : i32
    %c0_i32_1 = arith.constant 0 : i32
    return %c0_i32, %c0_i32_0 : i32, i32
  }
  func.func @transform_4(%arg0: i32) -> (i32, i32, i32) {
    %c0_i32 = arith.constant 0 : i32
    %c0_i32_0 = arith.constant 0 : i32
    %c0_i32_1 = arith.constant 0 : i32
    return %arg0, %c0_i32, %c0_i32_0 : i32, i32, i32
  }
}

</mosaic_0001>

<bundles_post_ra>
// kernel: tpu_custom_call.1
= control target key start
LH: loop header
LB: loop body
LE: loop exit
PB: predicated region body
PF: predicated region fallthrough
CT: control target
= control target key end

     0   :  { %9 = vsyncpa [#allocation3], 0  ;;  %s2903_s0 = inlined_call_operand.hbm [shape: f32[4,16,128], index: 0, kind: input, shape index: {}]   ;;  %s2904_s1 = inlined_call_operand.hbm [shape: bf16[4,128,128], index: 1, kind: input, shape index: {}]   ;;  %s2905_s2 = inlined_call_operand.hbm [shape: bf16[5,128,128], index: 2, kind: input, shape index: {}]   ;;  %s2906_s3 = inlined_call_operand.hbm [shape: f32[8,128], index: 3, kind: input, shape index: {}]   ;;  %s2907_s4 = inlined_call_operand.hbm [shape: f32[4,16,128], index: 4, kind: output, shape index: {}]  }
   0x1   :  { %11 = vsyncpa [#allocation3 + $0x1], 0 }
   0x2   :  { %12 = vsyncpa [#allocation6], 0 }
   0x3   :  { %13 = vsyncpa [#allocation9], 0 }
   0x4   :  { %14 = vsyncpa [#allocation4], 0 }
   0x5   :  { %16 = vsyncpa [#allocation4 + $0x1], 0  ;;  %s2538_s15 = smov 0   ;;  %s2540_s16 = smov 0  }
   0x6   :  { %s2542_s17 = smov 0   ;;  %s2544_s18 = smov 0  }
   0x7 LB: > { %s2559_s19 = sadd.s32 4294967295, %s2496_s18   ;;  %s1653_s20 = sadd.s32 4294967294, %s2496_s18   ;;  %s2496_s18 = sphi %s2544_s18, %s2939_s18   ;;  %s2492_s17 = sphi %s2542_s17, %s2938_s17   ;;  %s2488_s16 = sphi %s2540_s16, %s2937_s16   ;;  %s2484_s15 = sphi %s2538_s15, %s2936_s15  }
   0x8   : > { %p42_p0 = scmp.ne.s32.totalorder %s2488_s16, %s2484_s15  ;;  %p2908_p1 = scmp.eq.s32.totalorder %s2559_s19, 0 }
   0x9   : > { %p135_p3 = scmp.eq.s32.totalorder %s1653_s20, 1  ;;  %p1654_p5 = scmp.ge.s32.totalorder %s2496_s18, 1 }
   0xa   : > { %p2568_p4 = por %p2908_p1, %p42_p0  ;;  %p142_p7 = scmp.lt.s32.totalorder %s2496_s18, 3 }
   0xb   : > { %p2573_p6 = por %p135_p3, %p42_p0  ;;  %s2498_s24 = smov [#allocation5]  }
   0xc   : > { %s2912_s21 = scalar_select %p2568_p4, 1, 0 }
   0xd   : > { %s2913_s22 = scalar_select %p2573_p6, 1, 0 }
   0xe   : > { %p2578_p8 = pnand %p1654_p5, %p142_p7  ;;  %s154_s25 = sshll.u32 %s2498_s24, 4  ;;  %s155_s25 = int_to_ptr.vmem [resolvable:$true] %s154_s25 }
   0xf   : > { %s2499_s27 = smov [#allocation7]   ;;  %s2500_s29 = smov [#allocation8]  }
  0x10   : > { %s2914_s23 = scalar_select %p2578_p8, 1, 0 }
  0x11   : > { %p2187_p9 = pneg %p2578_p8  ;;  %s167_s28 = sshll.u32 %s2499_s27, 4  ;;  %s168_s28 = int_to_ptr.vmem [resolvable:$true] %s167_s28 }
  0x12   : > { %s181_s30 = sshll.u32 %s2500_s29, 4  ;;  %s2329_s5 = scalar_lea.vmem %s155_s25, 4096  ;;  %s182_s30 = int_to_ptr.vmem [resolvable:$true] %s181_s30 }
  0x13   : > { %p2587_p11 = pnand %p2187_p9, %p2908_p1  ;;  %p2330_p13 = scmp.ne.s32.totalorder %s155_s25, %s2329_s5 }
  0x14   : > { %p2337_p5 = scmp.lt.s32.totalorder %s155_s25, %s155_s25  ;;  %p2338_p7 = scmp.lt.s32.totalorder %s2329_s5, %s2329_s5 }
  0x15   : > { %p2320_p12 = pneg %p2587_p11 }
  0x16   : > { %p2339_p9 = por %p2338_p7, %p2337_p5 }
  0x17   : > { %p2332_p0 = pnand %p2330_p13, %p2320_p12 }
  0x19   : > { %p2333_p3 = pneg %p2332_p0 }
  0x1b   : > { %p2340_p10 = pnand %p2339_p9, %p2333_p3 }
  0x1d   : > { %2343 = shalt.err (!%p2340_p10)
}
  0x1e   : > { %s2501_s6 = smov 64   ;;  %s2502_s7 = smov 4  }
  0x1f   : > { %2190 = dma.hbm_to_vmem [thread:$0]  (!%p2587_p11), %s2904_s1, 4096, %s155_s25, [#allocation6], %s2501_s6, %s2501_s6, %s2502_s7  }
  0x20   : > { %s2355_s10 = scalar_lea.vmem %s168_s28, 5120  ;;  %p2363_p2 = scmp.lt.s32.totalorder %s168_s28, %s168_s28 }
  0x21   : > { %p2356_p1 = scmp.ne.s32.totalorder %s168_s28, %s2355_s10  ;;  %p2364_p6 = scmp.lt.s32.totalorder %s2355_s10, %s2355_s10 }
  0x23   : > { %p2358_p13 = pnand %p2356_p1, %p2320_p12  ;;  %p2365_p5 = por %p2364_p6, %p2363_p2 }
  0x25   : > { %p2359_p0 = pneg %p2358_p13 }
  0x27   : > { %p2366_p3 = pnand %p2365_p5, %p2359_p0 }
  0x29   : > { %2369 = shalt.err (!%p2366_p3)
}
  0x2a   : > { %2193 = dma.hbm_to_vmem [thread:$0]  (!%p2587_p11), %s2905_s2, 5120, %s168_s28, [#allocation6], %s2501_s6, %s2501_s6, %s2502_s7  }
  0x2b   : > { %s2381_s13 = scalar_lea.vmem %s182_s30, 128  ;;  %p2389_p9 = scmp.lt.s32.totalorder %s182_s30, %s182_s30 }
  0x2c   : > { %p2382_p10 = scmp.ne.s32.totalorder %s182_s30, %s2381_s13  ;;  %p2390_p13 = scmp.lt.s32.totalorder %s2381_s13, %s2381_s13 }
  0x2e   : > { %p2384_p7 = pnand %p2382_p10, %p2320_p12  ;;  %p2391_p4 = por %p2390_p13, %p2389_p9 }
  0x30   : > { %p2385_p1 = pneg %p2384_p7 }
  0x32   : > { %p2392_p2 = pnand %p2391_p4, %p2385_p1 }
  0x34   : > { %2395 = shalt.err (!%p2392_p2)
}
  0x35   : > { %2196 = dma.hbm_to_vmem [thread:$0]  (!%p2587_p11), %s2906_s3, 128, %s182_s30, [#allocation9]  }
  0x36   : > { %s2618_s24 = sadd.s32 1, %s2496_s18   ;;  %s29_s26 = sadd.s32 1, %s2492_s17 }
  0x37   : > { %s26_s25 = ssub.s32 %s2496_s18, %s2618_s24  ;;  %p36_p6 = scmp.ne.s32.totalorder %s2492_s17, %s2488_s16 }
  0x38   : > { %p27_p4 = scmp.eq.s32.totalorder %s26_s25, 0  ;;  %p37_p12 = scmp.eq.s32.totalorder %s2496_s18, 0 }
  0x39   : > { %p2208_p0 = scmp.lt.s32.totalorder %s2496_s18, 2  ;;  %p2916_p3 = scmp.eq.s32.totalorder %s2559_s19, 1 }
  0x3a   : > { %s2628_s27 = scalar_select %p27_p4, %s2492_s17, %s29_s26  }
  0x3b   : > { %p38_p5 = por %p37_p12, %p36_p6  ;;  %p2632_p10 = por %p2916_p3, %p36_p6 }
  0x3c   : > { %s192_s29 = sand.u32 1, %s2492_s17   ;;  %s1770_s5 = sshll.u32 %s2496_s18, 9 }
  0x3d   : > { %s2917_s28 = scalar_select %p2632_p10, 1, 0 }
  0x3e   : > { %s1659_s30 = sshll.u32 %s192_s29, 5  ;;  %s2641_s8 = scalar_lea.hbm %s2903_s0, %s1770_s5 }
  0x3f   : > { %s196_s9 = scalar_lea.vmem [#allocation2], %s1659_s30  ;;  %p2643_p11 = pnand %p2208_p0, %p38_p5 }
  0x40   : > { %s204_s10 = sshll.u32 %s196_s9, 4  ;;  %s2649_s12 = scalar_lea.sflag [#allocation3], %s192_s29  ;;  %s2647_s10 = int_to_ptr.vmem [resolvable:$true] %s204_s10 }
  0x41   : > { %s2396_s13 = scalar_lea.hbm %s2641_s8, 512  ;;  %p2398_p1 = pneg %p2643_p11 }
  0x42   : > { %p2397_p7 = scmp.ne.s32.totalorder %s2641_s8, %s2396_s13  ;;  %s2401_s25 = scalar_lea.hbm %s2903_s0, 1024 }
  0x43   : > { %p2402_p2 = scmp.lt.s32.totalorder %s2641_s8, %s2903_s0  ;;  %p2403_p4 = scmp.lt.s32.totalorder %s2401_s25, %s2396_s13 }
  0x44   : > { %p2399_p9 = pnand %p2398_p1, %p2397_p7 }
  0x45   : > { %p2404_p6 = por %p2403_p4, %p2402_p2 }
  0x46   : > { %p2400_p13 = pneg %p2399_p9 }
  0x48   : > { %p2405_p12 = pnand %p2404_p6, %p2400_p13 }
  0x4a   : > { %2408 = shalt.err (!%p2405_p12)
}
  0x4b   : > { %s2409_s29 = scalar_lea.vmem %s2647_s10, 512  ;;  %s2503_s30 = smov [#allocation2]  }
  0x4c   : > { %p2410_p0 = scmp.ne.s32.totalorder %s2647_s10, %s2409_s29  ;;  %s2414_s6 = sshll.u32 %s2503_s30, 4  ;;  %s2415_s6 = int_to_ptr.vmem [resolvable:$false] %s2414_s6 }
  0x4d   : > { %s2416_s7 = scalar_lea.vmem %s2415_s6, 1024  ;;  %p2417_p7 = scmp.lt.s32.totalorder %s2647_s10, %s2415_s6 }
  0x4e   : > { %p2412_p5 = pnand %p2410_p0, %p2398_p1  ;;  %p2418_p9 = scmp.lt.s32.totalorder %s2416_s7, %s2409_s29 }
  0x50   : > { %p2413_p3 = pneg %p2412_p5  ;;  %p2419_p10 = por %p2418_p9, %p2417_p7 }
  0x52   : > { %p2420_p8 = pnand %p2419_p10, %p2413_p3 }
  0x54   : > { %2423 = shalt.err (!%p2420_p8)
}
  0x55   : > { %s2504_s9 = smov 128   ;;  %s2505_s13 = smov 8  }
  0x56   : > { %2200 = dma.hbm_to_vmem [thread:$0]  (!%p2643_p11), %s2641_s8, 512, %s2647_s10, %s2649_s12, %s2504_s9, %s2504_s9, %s2505_s13  }
  0x57   : > { %p2919_p1 = scmp.ne.s32.totalorder %s2914_s23, 0 }
  0x58   : > { %s2673_s14 = sand.u32 (!%p2919_p1), 1, %s2488_s16   ;;  %p2920_p8 = scmp.ne.s32.totalorder (!%p2919_p1), %s2912_s21, 0 }
  0x59   : > { %216 = sbr.rel (%p2919_p1) target bundleno = 1081 (0x439), region = 36  ;;  %s1664_s20 = sshll.u32 (!%p2919_p1), %s2673_s14, 5 }
  0x5a   : > { %s219_s25 = scalar_lea.sflag (!%p2919_p1), [#allocation3], %s2673_s14  ;;  %s2679_s26 = scalar_lea.vmem (!%p2919_p1), [#allocation2], %s1664_s20 }
  0x5e   : > { %2467 = dma.done.wait (%p2920_p8), %s219_s25, 512  }
  0x5f   : > { %2469 = vsyncadd (%p2920_p8), %s219_s25, 4294966784  ;;  %p2921_p10 = scmp.eq.s32.totalorder %s2559_s19, 0 }
  0x61   : > { %2471 = dma.done.wait (%p2921_p10), [#allocation6], 9216   ;;  %p2922_p11 = pmov %p2921_p10 }
  0x62   : > { %p2923_p13 = pmov %p2921_p10 }
  0x63   : > { %2473 = vsyncadd (%p2922_p11), [#allocation6], 4294958080 }
  0x64   : > { %2475 = dma.done.wait (%p2923_p13), [#allocation9], 128   ;;  %p2924_p2 = pmov %p2921_p10 }
  0x65   : > { %v266_v0 = vlaneseq  ;;  %v2258_v2 = vld [vmem:[#allocation5 + $0x78] sm:$0xff]   ;;  %v2259_v3 = vld [vmem:[#allocation5 + $0x70] sm:$0xff]   ;;  %v2260_v5 = vld [vmem:[#allocation5 + $0x68] sm:$0xff]   ;;  %vm2506_vm2 = vmmov 1   ;;  %vm2508_vm11 = vmmov 0   ;;  %vm1209_vm12 = vcmask 1041409  }
  0x66   : > { %2477 = vsyncadd (%p2924_p2), [#allocation9], 4294967168  ;;  %1959 = vmatprep.subr.bf16.mxu1 %v2258_v2  ;;  %v2261_v6 = vld [vmem:[#allocation5 + $0x60] sm:$0xff]   ;;  %v2266_v8 = vld [vmem:[#allocation5 + $0xb8] sm:$0xff]   ;;  %s258_s23 = scalar_lea.vmem [#allocation10], %s1664_s20  ;;  %s1772_s10 = sshll.u32 %s2559_s19, 9 }
  0x67   : > { %v2693_v1 = vshrl.u32 %v266_v0, 7  ;;  %1960 = vmatpush3.bf16.msra.mxu1 %v2258_v2  ;;  %v2697_v9 = vld [vmem:[%s2679_s26] sm:$0xff]  ;;  %v2700_v10 = vld [vmem:[%s2679_s26 + $0x8] sm:$0xff]  ;;  %v2262_v11 = vld [vmem:[#allocation5 + $0x58] sm:$0xff]   ;;  %1999 = vmatprep.subr.bf16.mxu0 %v2266_v8  ;;  %s1551_s8 = sshll.u32 %s258_s23, 4  ;;  %s2860_s5 = scalar_lea.hbm %s2907_s4, %s1772_s10  ;;  %s2855_s8 = int_to_ptr.vmem [resolvable:$true] %s1551_s8 }
  0x68   : > { %1961 = vmatprep.subr.bf16.mxu1 %v2259_v3  ;;  %v354_v12 = vrot.slane %v2697_v9, 1  ;;  %v355_v13 = vrot.slane %v2700_v10, 1  ;;  %2000 = vmatpush3.bf16.msra.mxu0 %v2266_v8  ;;  %v2707_v14 = vpack.c.bf16 %v2700_v10, %v2697_v9  ;;  %v2710_v15 = vld [vmem:[%s2679_s26 + $0x10] sm:$0xff]  ;;  %v2270_v20 = vld [vmem:[#allocation5 + $0xa8] sm:$0xff]   ;;  %v2272_v23 = vld [vmem:[#allocation5 + $0xa0] sm:$0xff]   ;;  %v333_v31 = vrot.slane %v2697_v9, 7 }
  0x69   : > { %v268_v4 = vadd.s32 8, %v2693_v1  ;;  %vm358_vm0 = vcmp.lt.s32.totalorder %v2693_v1, 7  ;;  %v2268_v16 = vld [vmem:[#allocation5 + $0xb0] sm:$0xff]   ;;  %v356_v17 = vrot.slane %v2710_v15, 1  ;;  %v270_v25 = vadd.s32 24, %v2693_v1  ;;  %v2264_v26 = vld [vmem:[#allocation5 + $0x48] sm:$0xff]  }
  0x6a   : > { %1975 = vmatprep.mubr.bf16.mxu1 %v2707_v14  ;;  %2001 = vmatprep.subr.bf16.mxu0 %v2268_v16  ;;  %v361_v18 = vsel %vm358_vm0, %v354_v12, %v355_v13  ;;  %v2263_v19 = vld [vmem:[#allocation5 + $0x50] sm:$0xff]   ;;  %v275_v27 = vand.u32 15, %v2693_v1  ;;  %v2274_v28 = vld [vmem:[#allocation5 + $0x98] sm:$0xff]   ;;  %vm337_vm4 = vcmp.lt.s32.totalorder %v2693_v1, 1  ;;  %v2265_v30 = vld [vmem:[#allocation5 + $0x40] sm:$0xff]   ;;  %v334_v33 = vrot.slane %v2700_v10, 7 }
  0x6b   : > { %1962 = vmatpush3.bf16.msra.mxu1 %v2259_v3  ;;  %v282_v7 = vand.u32 15, %v268_v4  ;;  %v360_v21 = vsel %vm358_vm0, %v355_v13, %v356_v17  ;;  %v296_v29 = vand.u32 15, %v270_v25  ;;  %v2276_v32 = vld [vmem:[#allocation5 + $0x90] sm:$0xff]   ;;  %v265_v34 = vld [vmem:[%s2679_s26 + $0x18] sm:$0xff]  ;;  %v2278_v37 = vld [vmem:[#allocation5 + $0x88] sm:$0xff]   ;;  %v269_v55 = vadd.s32 16, %v2693_v1 }
  0x6c   : > { %1963 = vmatprep.subr.bf16.mxu1 %v2260_v5  ;;  %2002 = vmatpush3.bf16.msra.mxu0 %v2268_v16  ;;  %v1703_v24 = vpack.c.bf16 %v360_v21, %v361_v18  ;;  %vm1851_vm5 = vcmp.ne.s32.totalorder %v275_v27, 0  ;;  %v336_v35 = vrot.slane %v265_v34, 7  ;;  %v2267_v36 = vld [vmem:[#allocation5 + $0x38] sm:$0xff]   ;;  %v357_v38 = vrot.slane %v265_v34, 1  ;;  %v2269_v41 = vld [vmem:[#allocation5 + $0x30] sm:$0xff]   ;;  %v2280_v42 = vld [vmem:[#allocation5 + $0x80] sm:$0xff]  }
  0x6d   : > { %vm1853_vm1 = vcmp.ne.s32.totalorder %v282_v7, 15  ;;  %2003 = vmatprep.subr.bf16.mxu0 %v2270_v20  ;;  %vm1854_vm6 = vcmp.ne.s32.totalorder %v296_v29, 15  ;;  %vm2734_vm7 = vmpackc.low %vm2506_vm2, %vm1851_vm5  ;;  %v2739_v40 = vpack.c.bf16 %v265_v34, %v2710_v15  ;;  %v340_v43 = vsel %vm337_vm4, %v333_v31, %v334_v33  ;;  %v2271_v47 = vld [vmem:[#allocation5 + $0x28] sm:$0xff]   ;;  %v2273_v50 = vld [vmem:[#allocation5 + $0x20] sm:$0xff]   ;;  %s1537_s19 = scalar_lea.sflag [#allocation4], %s2673_s14  ;;  %s2424_s29 = scalar_lea.vmem %s2855_s8, 512 }
  0x6e   : > { %vm2721_vm3 = vmpackc.low %vm1853_vm1, %vm2506_vm2  ;;  %v341_v44 = vsel %vm337_vm4, %v336_v35, %v333_v31  ;;  %v359_v48 = vsel %vm358_vm0, %v356_v17, %v357_v38  ;;  %v362_v49 = vsel %vm358_vm0, %v357_v38, %v354_v12  ;;  %v2275_v52 = vld [vmem:[#allocation5 + $0x18] sm:$0xff]   ;;  %v2277_v53 = vld [vmem:[#allocation5 + $0x10] sm:$0xff]   ;;  %v335_v56 = vrot.slane %v2710_v15, 7  ;;  %p2425_p4 = scmp.ne.s32.totalorder %s2855_s8, %s2424_s29  ;;  %p2933_p6 = scmp.ne.s32.totalorder %s2917_s28, 0 }
  0x6f   : > { %1964 = vmatpush3.bf16.msra.mxu1 %v2260_v5  ;;  %2015 = vmatprep.mubr.msk.bf16.mxu0 %vm2721_vm3, %v1703_v24  ;;  %vm2746_vm8 = vmpackc.low %vm1854_vm6, %vm2506_vm2  ;;  %v1687_v46 = vpack.c.bf16 %v340_v43, %v341_v44  ;;  %v1707_v51 = vpack.c.bf16 %v362_v49, %v359_v48  ;;  %v2279_v54 = vld [vmem:[#allocation5 + $0x8] sm:$0xff]   ;;  %v2281_v57 = vld [vmem:[#allocation5] sm:$0xff]   ;;  %v289_v58 = vand.u32 15, %v269_v55  ;;  %s2510_s30 = smov [#allocation10]  }
  0x70   : > { %1965 = vmatprep.subr.bf16.mxu1 %v2261_v6  ;;  %2004 = vmatpush3.bf16.msra.mxu0 %v2270_v20  ;;  %v338_v59 = vsel %vm337_vm4, %v335_v56, %v336_v35  ;;  %v339_v60 = vsel %vm337_vm4, %v334_v33, %v335_v56  ;;  %v2282_v63 = vld [vmem:[#allocation7 + $0x78] sm:$0xff]   ;;  %v2283_v0 = vld [vmem:[#allocation7 + $0x70] sm:$0xff]   ;;  %v2285_v4 = vld [vmem:[#allocation7 + $0x68] sm:$0xff]   ;;  %p2426_p12 = pnand %p2425_p4, %p2933_p6  ;;  %s2428_s6 = sshll.u32 %s2510_s30, 4  ;;  %s2429_s6 = int_to_ptr.vmem [resolvable:$false] %s2428_s6 }
  0x71   : > { %2005 = vmatprep.subr.bf16.mxu0 %v2272_v23  ;;  %vm1852_vm9 = vcmp.ne.s32.totalorder %v289_v58, 0  ;;  %v1691_v61 = vpack.c.bf16 %v338_v59, %v339_v60  ;;  %v2284_v2 = vld [vmem:[#allocation7 + $0x38] sm:$0xff]   ;;  %v2286_v3 = vld [vmem:[#allocation7 + $0x30] sm:$0xff]   ;;  %v2288_v5 = vld [vmem:[#allocation7 + $0x28] sm:$0xff]   ;;  %s2430_s7 = scalar_lea.vmem %s2429_s6, 1024  ;;  %p2431_p5 = scmp.lt.s32.totalorder %s2855_s8, %s2429_s6 }
  0x72   : > { %vm2768_vm10 = vmpackc.low %vm2506_vm2, %vm1852_vm9  ;;  %v2289_v7 = vld [vmem:[#allocation7 + $0x58] sm:$0xff]   ;;  %v2290_v8 = vld [vmem:[#allocation7 + $0x20] sm:$0xff]   ;;  %p2427_p0 = pneg %p2426_p12  ;;  %p2432_p3 = scmp.lt.s32.totalorder %s2430_s7, %s2424_s29 }
  0x73   : > { %1966 = vmatpush3.bf16.msra.mxu1 %v2261_v6  ;;  %v2287_v6 = vld [vmem:[#allocation7 + $0x60] sm:$0xff]   ;;  %v2291_v9 = vld [vmem:[#allocation7 + $0x50] sm:$0xff]   ;;  %v2292_v10 = vld [vmem:[#allocation7 + $0x18] sm:$0xff]  }
  0x74   : > { %1967 = vmatprep.subr.bf16.mxu1 %v2262_v11  ;;  %2006 = vmatpush3.bf16.msra.mxu0 %v2272_v23  ;;  %v2294_v12 = vld [vmem:[#allocation7 + $0x10] sm:$0xff]   ;;  %v2295_v13 = vld [vmem:[#allocation7 + $0x40] sm:$0xff]   ;;  %v2296_v15 = vld [vmem:[#allocation7 + $0x8] sm:$0xff]   ;;  %p2433_p7 = por %p2432_p3, %p2431_p5 }
  0x75   : > { %2007 = vmatprep.subr.bf16.mxu0 %v2274_v28  ;;  %v2297_v16 = vld [vmem:[#allocation7] sm:$0xff]   ;;  %v2298_v17 = vld [vmem:[#allocation7 + $0xb8] sm:$0xff]   ;;  %v2304_v39 = vld [vmem:[#allocation7 + $0x88] sm:$0xff]  }
  0x76   : > { %v2305_v22 = vld [vmem:[#allocation7 + $0x80] sm:$0xff]   ;;  %v1841_v45 = vld [vmem:[#allocation7 + $0xe8] sm:$0xff]   ;;  %p2434_p9 = pnand %p2433_p7, %p2427_p0 }
  0x77   : > { %1968 = vmatpush3.bf16.msra.mxu1 %v2262_v11  ;;  %v2293_v11 = vld [vmem:[#allocation7 + $0x48] sm:$0xff]  }
  0x78   : > { %1969 = vmatprep.subr.bf16.mxu1 %v2263_v19  ;;  %2008 = vmatpush3.bf16.msra.mxu0 %v2274_v28 }
  0x79   : > { %2009 = vmatprep.subr.bf16.mxu0 %v2276_v32 }
  0x7b   : > { %1970 = vmatpush3.bf16.msra.mxu1 %v2263_v19 }
  0x7c   : > { %1971 = vmatprep.subr.bf16.mxu1 %v2264_v26  ;;  %2010 = vmatpush3.bf16.msra.mxu0 %v2276_v32 }
  0x7d   : > { %2011 = vmatprep.subr.bf16.mxu0 %v2278_v37 }
  0x7f   : > { %1972 = vmatpush3.bf16.msra.mxu1 %v2264_v26 }
  0x80   : > { %1973 = vmatprep.subr.bf16.mxu1 %v2265_v30  ;;  %2012 = vmatpush3.bf16.msra.mxu0 %v2278_v37 }
  0x81   : > { %2013 = vmatprep.subr.bf16.mxu0 %v2280_v42 }
  0x83   : > { %1974 = vmatpush3.bf16.msra.mxu1 %v2265_v30  ;;  %v1709_v30 = vld [vmem:[#allocation8] ss:$0 sm:$0xff] }
  0x84   : > { %1979 = vmatprep.subr.bf16.mxu1 %v2267_v36  ;;  %2014 = vmatpush3.bf16.msra.mxu0 %v2280_v42 }
  0x85   : > { %2039 = vmatprep.subr.bf16.mxu0 %v2284_v2 }
  0x86   : > { %1976 = vmatmul.mubr.bf16.vlgmr.msra.gmra.mxu1 %v2739_v40 }
  0x87   : > { %1980 = vmatpush3.bf16.msra.mxu1 %v2267_v36  ;;  %1995 = vmatprep.mubr.msk.bf16.mxu1 %vm2734_vm7, %v1687_v46 }
  0x88   : > { %1981 = vmatprep.subr.bf16.mxu1 %v2269_v41  ;;  %2016 = vmatmul.mubr.msk.bf16.vlgmr.msra.gmra.mxu0 %vm2746_vm8, %v1707_v51 }
  0x89   : > { %2040 = vmatpush3.bf16.msra.mxu0 %v2284_v2 }
  0x8a   : > { %2041 = vmatprep.subr.bf16.mxu0 %v2286_v3 }
  0x8b   : > { %1982 = vmatpush3.bf16.msra.mxu1 %v2269_v41 }
  0x8c   : > { %1983 = vmatprep.subr.bf16.mxu1 %v2271_v47 }
  0x8d   : > { %2042 = vmatpush3.bf16.msra.mxu0 %v2286_v3 }
  0x8e   : > { %2043 = vmatprep.subr.bf16.mxu0 %v2288_v5 }
  0x8f   : > { %1984 = vmatpush3.bf16.msra.mxu1 %v2271_v47 }
  0x90   : > { %1985 = vmatprep.subr.bf16.mxu1 %v2273_v50 }
  0x91   : > { %2044 = vmatpush3.bf16.msra.mxu0 %v2288_v5 }
  0x92   : > { %2045 = vmatprep.subr.bf16.mxu0 %v2290_v8 }
  0x93   : > { %1986 = vmatpush3.bf16.msra.mxu1 %v2273_v50 }
  0x94   : > { %1987 = vmatprep.subr.bf16.mxu1 %v2275_v52 }
  0x95   : > { %2046 = vmatpush3.bf16.msra.mxu0 %v2290_v8  ;;  %v2300_v8 = vld [vmem:[#allocation7 + $0xa8] sm:$0xff]  }
  0x96   : > { %2047 = vmatprep.subr.bf16.mxu0 %v2292_v10 }
  0x97   : > { %1988 = vmatpush3.bf16.msra.mxu1 %v2275_v52 }
  0x98   : > { %1989 = vmatprep.subr.bf16.mxu1 %v2277_v53 }
  0x99   : > { %2048 = vmatpush3.bf16.msra.mxu0 %v2292_v10  ;;  %v2302_v10 = vld [vmem:[#allocation7 + $0x98] sm:$0xff]  }
  0x9a   : > { %2049 = vmatprep.subr.bf16.mxu0 %v2294_v12 }
  0x9b   : > { %1990 = vmatpush3.bf16.msra.mxu1 %v2277_v53 }
  0x9c   : > { %1991 = vmatprep.subr.bf16.mxu1 %v2279_v54 }
  0x9d   : > { %2050 = vmatpush3.bf16.msra.mxu0 %v2294_v12 }
  0x9e   : > { %2051 = vmatprep.subr.bf16.mxu0 %v2296_v15 }
  0x9f   : > { %1992 = vmatpush3.bf16.msra.mxu1 %v2279_v54 }
  0xa0   : > { %1993 = vmatprep.subr.bf16.mxu1 %v2281_v57 }
  0xa1   : > { %2052 = vmatpush3.bf16.msra.mxu0 %v2296_v15 }
  0xa2   : > { %2053 = vmatprep.subr.bf16.mxu0 %v2297_v16 }
  0xa3   : > { %1994 = vmatpush3.bf16.msra.mxu1 %v2281_v57 }
  0xa4   : > { %2019 = vmatprep.subr.bf16.mxu1 %v2282_v63 }
  0xa5   : > { %2054 = vmatpush3.bf16.msra.mxu0 %v2297_v16  ;;  %v1843_v16 = vld [vmem:[#allocation7 + $0xf8] sm:$0xff]  }
  0xa6   : > { %1996 = vmatmul.mubr.msk.bf16.vlgmr.msra.gmra.mxu1 %vm2768_vm10, %v1691_v61 }
  0xa7   : > { %2020 = vmatpush3.bf16.msra.mxu1 %v2282_v63 }
  0xa8   : > { %2021 = vmatprep.subr.bf16.mxu1 %v2283_v0 }
  0xab   : > { %2022 = vmatpush3.bf16.msra.mxu1 %v2283_v0 }
  0xac   : > { %2023 = vmatprep.subr.bf16.mxu1 %v2285_v4 }
  0xaf   : > { %2024 = vmatpush3.bf16.msra.mxu1 %v2285_v4  ;;  %v2299_v4 = vld [vmem:[#allocation7 + $0xb0] sm:$0xff]  }
  0xb0   : > { %2025 = vmatprep.subr.bf16.mxu1 %v2287_v6 }
  0xb3   : > { %2026 = vmatpush3.bf16.msra.mxu1 %v2287_v6 }
  0xb4   : > { %2027 = vmatprep.subr.bf16.mxu1 %v2289_v7 }
  0xb7   : > { %2028 = vmatpush3.bf16.msra.mxu1 %v2289_v7 }
  0xb8   : > { %2029 = vmatprep.subr.bf16.mxu1 %v2291_v9 }
  0xbb   : > { %2030 = vmatpush3.bf16.msra.mxu1 %v2291_v9  ;;  %v2301_v9 = vld [vmem:[#allocation7 + $0xa0] sm:$0xff]  }
  0xbc   : > { %2031 = vmatprep.subr.bf16.mxu1 %v2293_v11 }
  0xbf   : > { %2032 = vmatpush3.bf16.msra.mxu1 %v2293_v11  ;;  %v2303_v11 = vld [vmem:[#allocation7 + $0x90] sm:$0xff]  }
  0xc0   : > { %2033 = vmatprep.subr.bf16.mxu1 %v2295_v13 }
  0xc3   : > { %2034 = vmatpush3.bf16.msra.mxu1 %v2295_v13 }
  0xc4   : > { %2059 = vmatprep.subr.bf16.mxu1 %v2298_v17 }
 0x146   : > { %v1977_v18 = vpop.f32.mrf.mxu1 }
 0x148   : > { %v494_v19 = vpop.f32.mrf.mxu1  ;;  %v2017_v21 = vpop.f32.mrf.mxu0 }
 0x14a   : > { %v1978_v20 = vpop.f32.mrf.mxu1  ;;  %v707_v25 = vpop.f32.mrf.mxu0 }
 0x14c   : > { %v497_v23 = vpop.f32.mrf.mxu1  ;;  %v2018_v32 = vpop.f32.mrf.mxu0 }
 0x14e   : > { %v710_v42 = vpop.f32.mrf.mxu0 }
 0x166   : > { %v1997_v24 = vpop.f32.mrf.mxu1 }
 0x167   : > { %v600_v26 = vadd.f32 %v1997_v24, %v1977_v18  ;;  %v1804_v18 = vunpack.c.h.bf16 %v1843_v16  ;;  %v1796_v24 = vunpack.c.h.bf16 %v1841_v45 }
 0x168   : > { %v591_v27 = vpop.f32.mrf.mxu1 }
 0x169   : > { %v724_v28 = vadd.f32 %v2017_v21, %v600_v26  ;;  %v592_v29 = vadd.f32 %v591_v27, %v494_v19  ;;  %v1803_v19 = vunpack.c.l.bf16 %v1843_v16  ;;  %v1840_v26 = vld [vmem:[#allocation7 + $0xe0] sm:$0xff]  }
 0x16a   : > { %v1998_v31 = vpop.f32.mrf.mxu1  ;;  %v1792_v27 = vunpack.c.h.bf16 %v1840_v26 }
 0x16b   : > { %v722_v33 = vadd.f32 %v707_v25, %v592_v29  ;;  %v603_v34 = vadd.f32 %v1998_v31, %v1978_v20  ;;  %v732_v36 = vadd.f32 %v1709_v30, %v724_v28  ;;  %v1842_v20 = vld [vmem:[#allocation7 + $0xf0] sm:$0xff]   ;;  %v1795_v25 = vunpack.c.l.bf16 %v1841_v45  ;;  %v1839_v29 = vld [vmem:[#allocation7 + $0xd8] sm:$0xff]  }
 0x16c   : > { %v594_v35 = vpop.f32.mrf.mxu1  ;;  %v1800_v21 = vunpack.c.h.bf16 %v1842_v20  ;;  %v1791_v28 = vunpack.c.l.bf16 %v1840_v26  ;;  %v1787_v31 = vunpack.c.l.bf16 %v1839_v29 }
 0x16d   : > { %v730_v37 = vadd.f32 %v1709_v30, %v722_v33  ;;  %v725_v38 = vadd.f32 %v2018_v32, %v603_v34  ;;  %v595_v41 = vadd.f32 %v594_v35, %v497_v23  ;;  %v736_v46 = vmax.f32 %v732_v36, 0.0  ;;  %v1838_v32 = vld [vmem:[#allocation7 + $0xd0] sm:$0xff]   ;;  %v1837_v35 = vld [vmem:[#allocation7 + $0xc8] sm:$0xff]  }
 0x16e   : > { %v1799_v23 = vunpack.c.l.bf16 %v1842_v20  ;;  %v1784_v33 = vunpack.c.h.bf16 %v1838_v32  ;;  %v1783_v34 = vunpack.c.l.bf16 %v1838_v32  ;;  %v1780_v36 = vunpack.c.h.bf16 %v1837_v35 }
 0x16f   : > { %v733_v43 = vadd.f32 %v1709_v30, %v725_v38  ;;  %v723_v44 = vadd.f32 %v710_v42, %v595_v41  ;;  %v734_v47 = vmax.f32 %v730_v37, 0.0  ;;  %v740_v52 = vrot.slane %v736_v46, 7  ;;  %v1774_v38 = vld [vmem:[#allocation7 + $0xc0] sm:$0xff]  }
 0x170   : > { %v752_v53 = vrot.slane %v736_v46, 1  ;;  %v1779_v37 = vunpack.c.l.bf16 %v1837_v35  ;;  %v1776_v41 = vunpack.c.h.bf16 %v1774_v38  ;;  %v1775_v42 = vunpack.c.l.bf16 %v1774_v38 }
 0x171   : > { %v737_v48 = vmax.f32 %v733_v43, 0.0  ;;  %v731_v49 = vadd.f32 %v1709_v30, %v723_v44  ;;  %v738_v54 = vrot.slane %v734_v47, 7  ;;  %v750_v55 = vrot.slane %v734_v47, 1  ;;  %v332_v43 = vld [vmem:[#allocation8 + $0x5] sm:$0x1]  ;;  %v1850_v44 = vld [vmem:[#allocation7 + $0x138] sm:$0xff]  }
 0x172   : > { %v1788_v30 = vunpack.c.h.bf16 %v1839_v29  ;;  %2169 = vpush %v332_v43 }
 0x173   : > { %v741_v50 = vrot.slane %v737_v48, 7  ;;  %v735_v51 = vmax.f32 %v731_v49, 0.0  ;;  %v781_v59 = vpack.c.bf16 %v737_v48, %v736_v46  ;;  %v753_v12 = vrot.slane %v737_v48, 1  ;;  %v1849_v46 = vld [vmem:[#allocation7 + $0x130] sm:$0xff]  }
 0x174   : > { %v1835_v48 = vunpack.c.l.bf16 %v1850_v44  ;;  %v1832_v49 = vunpack.c.h.bf16 %v1849_v46 }
 0x175   : > { %v739_v56 = vrot.slane %v735_v51, 7  ;;  %v751_v57 = vrot.slane %v735_v51, 1  ;;  %v780_v58 = vpack.c.bf16 %v735_v51, %v734_v47  ;;  %v745_v60 = vsel %vm337_vm4, %v741_v50, %v738_v54 }
 0x176   : > { %v742_v61 = vsel %vm337_vm4, %v740_v52, %v741_v50  ;;  %v754_v62 = vsel %vm358_vm0, %v752_v53, %v753_v12  ;;  %v757_v13 = vsel %vm358_vm0, %v753_v12, %v750_v55  ;;  %v1836_v47 = vunpack.c.h.bf16 %v1850_v44  ;;  %v1848_v50 = vld [vmem:[#allocation7 + $0x128] sm:$0xff]  }
 0x177   : > { %2035 = vmatprep.mubr.bf16.mxu1 %v780_v58  ;;  %v744_v63 = vsel %vm337_vm4, %v738_v54, %v739_v56  ;;  %v755_v0 = vsel %vm358_vm0, %v751_v57, %v752_v53  ;;  %v756_v2 = vsel %vm358_vm0, %v750_v55, %v751_v57  ;;  %v743_v3 = vsel %vm337_vm4, %v739_v56, %v740_v52  ;;  %v1847_v53 = vld [vmem:[#allocation7 + $0x120] sm:$0xff]   ;;  %v1846_v56 = vld [vmem:[#allocation7 + $0x118] sm:$0xff]  }
 0x178   : > { %2036 = vmatmul.mubr.bf16.vlgmr.msra.gmra.mxu1 %v781_v59  ;;  %v1728_v5 = vpack.c.bf16 %v744_v63, %v745_v60  ;;  %v1744_v6 = vpack.c.bf16 %v755_v0, %v756_v2  ;;  %v1732_v7 = vpack.c.bf16 %v742_v61, %v743_v3  ;;  %v1748_v15 = vpack.c.bf16 %v757_v13, %v754_v62  ;;  %v1845_v59 = vld [vmem:[#allocation7 + $0x110] sm:$0xff]   ;;  %v1844_v63 = vld [vmem:[#allocation7 + $0x108] sm:$0xff]  }
 0x179   : > { %2060 = vmatpush3.bf16.msra.mxu1 %v2298_v17  ;;  %v2507_v17 = vmov 0.0   ;;  %v1831_v51 = vunpack.c.l.bf16 %v1849_v46  ;;  %v1828_v52 = vunpack.c.h.bf16 %v1848_v50  ;;  %v1827_v54 = vunpack.c.l.bf16 %v1848_v50  ;;  %v2306_v50 = vld [vmem:[#allocation5 + $0xf8] sm:$0xff]  }
 0x17a   : > { %2055 = vmatprep.mubr.msk.bf16.mxu0 %vm2734_vm7, %v1728_v5  ;;  %2075 = vmatprep.mubr.msk.bf16.mxu1 %vm2721_vm3, %v1744_v6  ;;  %v1824_v55 = vunpack.c.h.bf16 %v1847_v53  ;;  %v1823_v57 = vunpack.c.l.bf16 %v1847_v53  ;;  %v1820_v58 = vunpack.c.h.bf16 %v1846_v56  ;;  %v1819_v60 = vunpack.c.l.bf16 %v1846_v56  ;;  %v2308_v53 = vld [vmem:[#allocation5 + $0xe8] sm:$0xff]  }
 0x17b   : > { %2056 = vmatmul.mubr.msk.bf16.vlgmr.msra.gmra.mxu0 %vm2768_vm10, %v1732_v7  ;;  %2061 = vmatprep.subr.bf16.mxu1 %v2299_v4  ;;  %v1816_v61 = vunpack.c.h.bf16 %v1845_v59  ;;  %v1815_v0 = vunpack.c.l.bf16 %v1845_v59  ;;  %v1812_v2 = vunpack.c.h.bf16 %v1844_v63  ;;  %v2312_v56 = vld [vmem:[#allocation5 + $0xc8] sm:$0xff]  }
 0x17c   : > { %2079 = vmatprep.subr.mxu0 %v2507_v17  ;;  %2111 = vmatprep.mubr.msk.f32.mxu0 %vm2508_vm11, %v2507_v17 }
 0x17d   : > { %2062 = vmatpush3.bf16.msra.mxu1 %v2299_v4  ;;  %2080 = vmatpush3.msra.mxu0 %v1804_v18 }
 0x17e   : > { %2063 = vmatprep.subr.bf16.mxu1 %v2300_v8  ;;  %2081 = vmatprep.subr.mxu0 %v2507_v17 }
 0x17f   : > { %2082 = vmatpush3.msra.mxu0 %v1803_v19 }
 0x180   : > { %2083 = vmatprep.subr.mxu0 %v2507_v17 }
 0x181   : > { %2064 = vmatpush3.bf16.msra.mxu1 %v2300_v8  ;;  %2084 = vmatpush3.msra.mxu0 %v1800_v21 }
 0x182   : > { %2065 = vmatprep.subr.bf16.mxu1 %v2301_v9  ;;  %2085 = vmatprep.subr.mxu0 %v2507_v17 }
 0x183   : > { %2086 = vmatpush3.msra.mxu0 %v1799_v23 }
 0x184   : > { %2087 = vmatprep.subr.mxu0 %v2507_v17 }
 0x185   : > { %2066 = vmatpush3.bf16.msra.mxu1 %v2301_v9  ;;  %2088 = vmatpush3.msra.mxu0 %v1796_v24 }
 0x186   : > { %2067 = vmatprep.subr.bf16.mxu1 %v2302_v10  ;;  %2089 = vmatprep.subr.mxu0 %v2507_v17 }
 0x187   : > { %2090 = vmatpush3.msra.mxu0 %v1795_v25 }
 0x188   : > { %2091 = vmatprep.subr.mxu0 %v2507_v17 }
 0x189   : > { %2068 = vmatpush3.bf16.msra.mxu1 %v2302_v10  ;;  %2092 = vmatpush3.msra.mxu0 %v1792_v27 }
 0x18a   : > { %2069 = vmatprep.subr.bf16.mxu1 %v2303_v11  ;;  %2093 = vmatprep.subr.mxu0 %v2507_v17 }
 0x18b   : > { %2094 = vmatpush3.msra.mxu0 %v1791_v28 }
 0x18c   : > { %2095 = vmatprep.subr.mxu0 %v2507_v17 }
 0x18d   : > { %2070 = vmatpush3.bf16.msra.mxu1 %v2303_v11  ;;  %2096 = vmatpush3.msra.mxu0 %v1788_v30 }
 0x18e   : > { %2071 = vmatprep.subr.bf16.mxu1 %v2304_v39  ;;  %2097 = vmatprep.subr.mxu0 %v2507_v17 }
 0x18f   : > { %2098 = vmatpush3.msra.mxu0 %v1787_v31 }
 0x190   : > { %2099 = vmatprep.subr.mxu0 %v2507_v17 }
 0x191   : > { %2072 = vmatpush3.bf16.msra.mxu1 %v2304_v39  ;;  %2100 = vmatpush3.msra.mxu0 %v1784_v33 }
 0x192   : > { %2073 = vmatprep.subr.bf16.mxu1 %v2305_v22  ;;  %2101 = vmatprep.subr.mxu0 %v2507_v17 }
 0x193   : > { %2102 = vmatpush3.msra.mxu0 %v1783_v34 }
 0x194   : > { %2103 = vmatprep.subr.mxu0 %v2507_v17 }
 0x195   : > { %2074 = vmatpush3.bf16.msra.mxu1 %v2305_v22  ;;  %2104 = vmatpush3.msra.mxu0 %v1780_v36 }
 0x196   : > { %2114 = vmatprep.subr.mxu1 %v2507_v17  ;;  %2105 = vmatprep.subr.mxu0 %v2507_v17 }
 0x197   : > { %2106 = vmatpush3.msra.mxu0 %v1779_v37 }
 0x198   : > { %2076 = vmatmul.mubr.msk.bf16.vlgmr.msra.gmra.mxu1 %vm2746_vm8, %v1748_v15  ;;  %2107 = vmatprep.subr.mxu0 %v2507_v17  ;;  %v1750_v15 = vld [vmem:[#allocation8 + $0x1] ss:$0 sm:$0xff] }
 0x199   : > { %2146 = vmatprep.mubr.msk.f32.mxu1 %vm2508_vm11, %v2507_v17  ;;  %2108 = vmatpush3.msra.mxu0 %v1776_v41 }
 0x19a   : > { %2109 = vmatprep.subr.mxu0 %v2507_v17  ;;  %2115 = vmatpush3.msra.mxu1 %v1836_v47  ;;  %v1811_v47 = vunpack.c.l.bf16 %v1844_v63 }
 0x19b   : > { %2110 = vmatpush3.msra.mxu0 %v1775_v42  ;;  %2116 = vmatprep.subr.mxu1 %v2507_v17 }
 0x19c   : > { %2117 = vmatpush3.msra.mxu1 %v1835_v48  ;;  %v1806_v48 = vld [vmem:[#allocation7 + $0x100] sm:$0xff]   ;;  %2149 = vmatprep.subr.bf16.mxu0 %v2306_v50 }
 0x19d   : > { %2118 = vmatprep.subr.mxu1 %v2507_v17 }
 0x19e   : > { %2119 = vmatpush3.msra.mxu1 %v1832_v49  ;;  %v1808_v49 = vunpack.c.h.bf16 %v1806_v48 }
 0x19f   : > { %2120 = vmatprep.subr.mxu1 %v2507_v17 }
 0x1a0   : > { %2121 = vmatpush3.msra.mxu1 %v1831_v51  ;;  %v1807_v51 = vunpack.c.l.bf16 %v1806_v48 }
 0x1a1   : > { %2122 = vmatprep.subr.mxu1 %v2507_v17 }
 0x1a2   : > { %2123 = vmatpush3.msra.mxu1 %v1828_v52  ;;  %v2307_v52 = vld [vmem:[#allocation5 + $0xf0] sm:$0xff]  }
 0x1a3   : > { %2124 = vmatprep.subr.mxu1 %v2507_v17  ;;  %s2170_s21 = spop %2169 }
 0x1a4   : > { %2125 = vmatpush3.msra.mxu1 %v1827_v54  ;;  %v2310_v54 = vld [vmem:[#allocation5 + $0xd8] sm:$0xff]   ;;  %v1285_v59 = vstv %s2170_s21 }
 0x1a5   : > { %2126 = vmatprep.subr.mxu1 %v2507_v17 }
 0x1a6   : > { %2127 = vmatpush3.msra.mxu1 %v1824_v55  ;;  %v2311_v55 = vld [vmem:[#allocation5 + $0xd0] sm:$0xff]  }
 0x1a7   : > { %2128 = vmatprep.subr.mxu1 %v2507_v17 }
 0x1a8   : > { %2129 = vmatpush3.msra.mxu1 %v1823_v57  ;;  %v1751_v57 = vld [vmem:[#allocation8 + $0x3] ss:$0 sm:$0xff] }
 0x1a9   : > { %2130 = vmatprep.subr.mxu1 %v2507_v17 }
 0x1aa   : > { %2131 = vmatpush3.msra.mxu1 %v1820_v58 }
 0x1ab   : > { %2132 = vmatprep.subr.mxu1 %v2507_v17 }
 0x1ac   : > { %2133 = vmatpush3.msra.mxu1 %v1819_v60 }
 0x1ad   : > { %2134 = vmatprep.subr.mxu1 %v2507_v17 }
 0x1ae   : > { %2135 = vmatpush3.msra.mxu1 %v1816_v61 }
 0x1af   : > { %2136 = vmatprep.subr.mxu1 %v2507_v17 }
 0x1b0   : > { %2137 = vmatpush3.msra.mxu1 %v1815_v0 }
 0x1b1   : > { %2138 = vmatprep.subr.mxu1 %v2507_v17 }
 0x1b2   : > { %2139 = vmatpush3.msra.mxu1 %v1812_v2  ;;  %v1752_v2 = vld [vmem:[#allocation8 + $0x4] ss:$0 sm:$0xff] }
 0x1b3   : > { %2140 = vmatprep.subr.mxu1 %v2507_v17 }
 0x1b4   : > { %2141 = vmatpush3.msra.mxu1 %v1811_v47 }
 0x1b5   : > { %2142 = vmatprep.subr.mxu1 %v2507_v17 }
 0x1b6   : > { %2143 = vmatpush3.msra.mxu1 %v1808_v49 }
 0x1b7   : > { %2144 = vmatprep.subr.mxu1 %v2507_v17  ;;  %v2313_v17 = vld [vmem:[#allocation5 + $0xc0] sm:$0xff]  }
 0x1b8   : > { %2145 = vmatpush3.msra.mxu1 %v1807_v51 }
 0x238   : > { %v2037_v3 = vpop.f32.mrf.mxu1 }
 0x23a   : > { %v881_v4 = vpop.f32.mrf.mxu1 }
 0x23b   : > { %v2057_v5 = vpop.f32.mrf.mxu0 }
 0x23c   : > { %v2038_v6 = vpop.f32.mrf.mxu1  ;;  %v987_v11 = vadd.f32 %v2057_v5, %v2037_v3 }
 0x23d   : > { %v978_v7 = vpop.f32.mrf.mxu0 }
 0x23e   : > { %v884_v8 = vpop.f32.mrf.mxu1  ;;  %v979_v12 = vadd.f32 %v978_v7, %v881_v4 }
 0x23f   : > { %v2058_v9 = vpop.f32.mrf.mxu0 }
 0x240   : > { %v990_v62 = vadd.f32 %v2058_v9, %v2038_v6 }
 0x241   : > { %v981_v39 = vpop.f32.mrf.mxu0 }
 0x242   : > { %v982_v18 = vadd.f32 %v981_v39, %v884_v8 }
 0x258   : > { %v2077_v10 = vpop.f32.mrf.mxu1 }
 0x259   : > { %v1111_v13 = vadd.f32 %v2077_v10, %v987_v11 }
 0x25a   : > { %v1094_v22 = vpop.f32.mrf.mxu1 }
 0x25b   : > { %v1109_v19 = vadd.f32 %v1094_v22, %v979_v12  ;;  %v2830_v23 = vadd.f32 %v1750_v15, %v1111_v13 }
 0x25c   : > { %v2078_v16 = vpop.f32.mrf.mxu1 }
 0x25d   : > { %v1112_v20 = vadd.f32 %v2078_v16, %v990_v62  ;;  %v2834_v25 = vadd.f32 %v1750_v15, %v1109_v19  ;;  %v1754_v16 = vld [vmem:[#allocation8 + $0x2] ss:$0 sm:$0xff] }
 0x25e   : > { %v1097_v21 = vpop.f32.mrf.mxu1 }
 0x25f   : > { %v2832_v45 = vadd.f32 %v1750_v15, %v1112_v20  ;;  %v1110_v24 = vadd.f32 %v1097_v21, %v982_v18 }
 0x261   : > { %v1128_v26 = vadd.f32 %v2832_v45, %v2830_v23  ;;  %v2838_v27 = vadd.f32 %v1750_v15, %v1110_v24  ;;  %v1512_v15 = vsub.s32 0, %v2693_v1 }
 0x263   : > { %v1129_v28 = vrot.slane %v1128_v26, 4  ;;  %v1121_v29 = vadd.f32 %v2838_v27, %v2834_v25 }
 0x265   : > { %v1130_v30 = vadd.f32 %v1129_v28, %v1128_v26  ;;  %v1122_v31 = vrot.slane %v1121_v29, 4 }
 0x267   : > { %v1131_v32 = vrot.slane %v1130_v30, 2  ;;  %v1123_v33 = vadd.f32 %v1122_v31, %v1121_v29 }
 0x269   : > { %v1132_v34 = vadd.f32 %v1131_v32, %v1130_v30  ;;  %v1124_v35 = vrot.slane %v1123_v33, 2 }
 0x26b   : > { %v1125_v36 = vadd.f32 %v1124_v35, %v1123_v33  ;;  %v1133_v37 = vrot.slane %v1132_v34, 1 }
 0x26d   : > { %v1126_v38 = vrot.slane %v1125_v36, 1  ;;  %v1134_v41 = vadd.f32 %v1133_v37, %v1132_v34 }
 0x26f   : > { %v1127_v42 = vadd.f32 %v1126_v38, %v1125_v36  ;;  %v1136_v44 = vmul.f32 0.0625, %v1134_v41 }
 0x271   : > { %v1135_v43 = vmul.f32 0.0625, %v1127_v42 }
 0x273   : > { %v1210_v46 = vsel %vm1209_vm12, %v1136_v44, %v1135_v43 }
 0x274   : > { %2112 = vmatmul.mubr.f32.vlgmr.msra.gmra.mxu0 %v1210_v46 }
 0x275   : > { %2165 = vmatprep.mubr.bf16.mxu0 %v2707_v14  ;;  %2150 = vmatpush3.bf16.msra.mxu0 %v2306_v50  ;;  %v2309_v14 = vld [vmem:[#allocation5 + $0xe0] sm:$0xff]  }
 0x276   : > { %2151 = vmatprep.subr.bf16.mxu0 %v2307_v52 }
 0x279   : > { %2152 = vmatpush3.bf16.msra.mxu0 %v2307_v52 }
 0x27a   : > { %2153 = vmatprep.subr.bf16.mxu0 %v2308_v53 }
 0x27d   : > { %2154 = vmatpush3.bf16.msra.mxu0 %v2308_v53 }
 0x27e   : > { %2155 = vmatprep.subr.bf16.mxu0 %v2309_v14 }
 0x281   : > { %2156 = vmatpush3.bf16.msra.mxu0 %v2309_v14 }
 0x282   : > { %2157 = vmatprep.subr.bf16.mxu0 %v2310_v54 }
 0x285   : > { %2158 = vmatpush3.bf16.msra.mxu0 %v2310_v54 }
 0x286   : > { %2159 = vmatprep.subr.bf16.mxu0 %v2311_v55 }
 0x289   : > { %2160 = vmatpush3.bf16.msra.mxu0 %v2311_v55 }
 0x28a   : > { %2161 = vmatprep.subr.bf16.mxu0 %v2312_v56 }
 0x28d   : > { %2162 = vmatpush3.bf16.msra.mxu0 %v2312_v56 }
 0x28e   : > { %2163 = vmatprep.subr.bf16.mxu0 %v2313_v17 }
 0x291   : > { %2164 = vmatpush3.bf16.msra.mxu0 %v2313_v17 }
 0x294   : > { %2166 = vmatmul.mubr.bf16.vlgmr.msra.gmra.mxu0 %v2739_v40  ;;  %v2509_v40 = vmov 1966171168  }
 0x295   : > { %v1489_v9 = vunpack.c.l.s4 %v2509_v40 }
 0x297   : > { %v1490_v11 = vunpack.c.0.s8 %v1489_v9 }
 0x299   : > { %v1493_v22 = vsub.s32 %v1490_v11, %v2693_v1 }
 0x334   : > { %v1278_v58 = vpop.f32.mrf.mxu0 }
 0x335   : > { %v1279_v60 = vadd.f32 %v1751_v57, %v1278_v58 }
 0x336   : > { %v2113_v61 = vpop.f32.mrf.mxu0 }
 0x337   : > { %vm1282_vm13 = vcmp.ge.f32.partialorder %v1279_v60, 0.0  ;;  %v1287_v63 = vmul.f32 %v1285_v59, %v1279_v60 }
 0x339   : > { %v1288_v0 = vsel %vm1282_vm13, %v1279_v60, %v1287_v63 }
 0x33a   : > { %2147 = vmatmul.mubr.f32.vlgmr.msra.gmra.mxu1 %v1288_v0 }
 0x354   : > { %v2167_v10 = vpop.f32.mrf.mxu0 }
 0x355   : > { %v1481_v32 = vadd.f32 %v2167_v10, %v1754_v16 }
 0x356   : > { %v1472_v39 = vpop.f32.mrf.mxu0 }
 0x357   : > { %v1473_v26 = vadd.f32 %v1754_v16, %v1472_v39 }
 0x358   : > { %v2168_v62 = vpop.f32.mrf.mxu0 }
 0x359   : > { %v1484_v33 = vadd.f32 %v2168_v62, %v1754_v16 }
 0x35a   : > { %v1475_v20 = vpop.f32.mrf.mxu0 }
 0x35b   : > { %v1476_v30 = vadd.f32 %v1754_v16, %v1475_v20 }
 0x3fa   : > { %v1359_v3 = vpop.f32.mrf.mxu1 }
 0x3fb   : > { %v1360_v4 = vadd.f32 %v1752_v2, %v1359_v3 }
 0x3fc   : > { %v2148_v5 = vpop.f32.mrf.mxu1 }
 0x3fd   : > { %v1753_v6 = vmul.f32 -1.442695, %v1360_v4 }
 0x3ff   : > { %2314 = vpow2.f32 %v1753_v6 }
 0x40c   : > { %v2315_v7 = vpop.eup %2314 }
 0x40d   : > { %v1366_v8 = vadd.f32 1.0, %v2315_v7 }
 0x40f   : > { %2316 = vrcp.f32 %v1366_v8 }
 0x41c   : > { %v2317_v12 = vpop.eup %2316 }
 0x41d   : > { %v1494_v13 = vrot.slane %v2317_v12, %v1493_v22 }
 0x41f   : > { %v1495_v18 = vcombine.high %v1494_v13, %v1494_v13  ;;  %v1502_v19 = vrot.slane %v1494_v13, %v1493_v22 }
 0x421   : > { %v1509_v21 = vrot.slane %v1495_v18, %v1493_v22  ;;  %v1513_v24 = vrot.slane %v1502_v19, %v1512_v15 }
 0x423   : > { %v1517_v28 = vrot.slane %v1509_v21, %v1512_v15  ;;  %v1520_v29 = vmul.f32 %v1513_v24, %v2834_v25  ;;  %v1521_v31 = vmul.f32 %v1513_v24, %v2838_v27 }
 0x425   : > { %v1522_v1 = vmul.f32 %v1517_v28, %v2830_v23  ;;  %v1524_v34 = vadd.f32 %v1520_v29, %v1473_v26  ;;  %v1523_v35 = vmul.f32 %v1517_v28, %v2832_v45  ;;  %v1525_v36 = vadd.f32 %v1521_v31, %v1476_v30 }
 0x427   : > { %v1526_v37 = vadd.f32 %v1522_v1, %v1481_v32  ;;  %v1528_v25 = vmax.f32 %v1524_v34, 0.0  ;;  %v1527_v27 = vadd.f32 %v1523_v35, %v1484_v33  ;;  %v1529_v38 = vmax.f32 %v1525_v36, 0.0 }
 0x429   : > { %v1530_v23 = vmax.f32 %v1526_v37, 0.0  ;;  %1532 = vst [vmem:[%s258_s23] sm:$0xff] %v1528_v25  ;;  %v1531_v45 = vmax.f32 %v1527_v27, 0.0  ;;  %1533 = vst [vmem:[%s258_s23 + $0x8] sm:$0xff] %v1529_v38 }
 0x42b   : > { %1534 = vst [vmem:[%s258_s23 + $0x10] sm:$0xff] %v1530_v23  ;;  %1535 = vst [vmem:[%s258_s23 + $0x18] sm:$0xff] %v1531_v45 }
 0x42c   : > { %2437 = shalt.err (!%p2434_p9)
}
 0x42d   : > { %s2438_s9 = scalar_lea.hbm %s2860_s5, 512  ;;  %s2442_s25 = scalar_lea.hbm %s2907_s4, 1024 }
 0x42e   : > { %p2439_p1 = scmp.ne.s32.totalorder %s2860_s5, %s2438_s9  ;;  %p2443_p11 = scmp.lt.s32.totalorder %s2860_s5, %s2907_s4 }
 0x42f   : > { %p2444_p13 = scmp.lt.s32.totalorder %s2442_s25, %s2438_s9 }
 0x430   : > { %p2440_p8 = pnand %p2439_p1, %p2933_p6 }
 0x431   : > { %p2445_p2 = por %p2444_p13, %p2443_p11 }
 0x432   : > { %p2441_p10 = pneg %p2440_p8 }
 0x434   : > { %p2446_p4 = pnand %p2445_p2, %p2441_p10 }
 0x436   : > { %2449 = shalt.err (!%p2446_p4)
}
 0x437   : > { %s2511_s23 = smov 128   ;;  %s2512_s10 = smov 8  }
 0x438   : > { %2185 = dma.vmem_to_hbm [thread:$0]  (%p2933_p6), %s2855_s8, 512, %s2860_s5, %s1537_s19, %s2511_s23, %s2511_s23, %s2512_s10  }
 0x439 PF: > { %s1566_s11 = sand.u32 1, %s2484_s15   ;;  %p2934_p12 = scmp.ne.s32.totalorder %s2913_s22, 0 }
 0x43a   : > { %p2935_p0 = scmp.ge.s32.totalorder %s2496_s18, 2  ;;  %s1567_s12 = scalar_lea.sflag [#allocation4], %s1566_s11 }
 0x43c   : > { %p2202_p5 = pnand %p2935_p0, %p2934_p12 }
 0x43e   : > { %p2203_p3 = pneg %p2202_p5 }
 0x440   : > { %2479 = dma.done.wait (%p2203_p3), %s1567_s12, 512  }
 0x441   : > { %2481 = vsyncadd (%p2203_p3), %s1567_s12, 4294966784  ;;  %p19_p7 = scmp.ge.s32.totalorder %s2618_s24, 4   ;;  %s2936_s15 = smov %s2488_s16 }
 0x442   : > { %s2937_s16 = smov %s2492_s17  ;;  %s2938_s17 = smov %s2628_s27 }
 0x443   : > { %s2939_s18 = smov %s2618_s24  ;;  %21 = sbr.rel (!%p19_p7) target bundleno = 7 (0x7), region = 100 }
 0x448   :  { %1572 = vsyncpa [#allocation3], 1 }
 0x449   :  { %1574 = vsyncpa [#allocation3 + $0x1], 1 }
 0x44a   :  { %1575 = vsyncpa [#allocation6], 1 }
 0x44b   :  { %1576 = vsyncpa [#allocation9], 1 }
 0x44c   :  { %1577 = vsyncpa [#allocation4], 1 }
 0x44d   :  { %1579 = vsyncpa [#allocation4 + $0x1], 1 }

</bundles_post_ra>
